<compile_context>
chip_gen: v7x
topology: tpu7x:2x2x1
jax: 0.10.0
libtpu: 0.0.40
codegen_flags: <defaults>
</compile_context>

<pallas_src>
import jax
import jax.numpy as jnp
from jax.experimental import pallas as pl
from jax.experimental.pallas import tpu as pltpu

HP = 128    # hidden dim padded to one full vreg lane width per gate
OPAD = 128  # output lane padding


def lstm_kernel(x_ref, wih_ref, whh_ref, b_ref, wlin_ref, blin_ref, out_ref):
    """Full LSTM recurrence with fused linear head, single invocation.

    x_ref:    (S, I)            input sequence (batch=1 squeezed)
    wih_ref:  (I, 4*HP)         input->gates weights, gate-major, lane-padded
    whh_ref:  (HP, 4*HP)        hidden->gates weights, gate-major, lane-padded
    b_ref:    (1, 4*HP)         b_ih + b_hh, gate-major, lane-padded
    wlin_ref: (S, HP, OPAD)     linear head weights, per-timestep slabs
    blin_ref: (1, OPAD)         linear head bias (padded)
    out_ref:  (1, OPAD)         predictions (padded; wrapper slices to O)
    """
    S = x_ref.shape[0]

    # Hoisted input projection for all timesteps: one (S,I)@(I,4HP) matmul.
    xw = (jnp.dot(x_ref[...], wih_ref[...], preferred_element_type=jnp.float32)
          + b_ref[...])                              # (S, 4*HP)

    # Hoisted loop-invariant weights (W_hh is only a few vregs).
    whh = whh_ref[...]                               # (HP, 4*HP)
    wlin = wlin_ref[...]                             # (S, HP, OPAD)

    h = jnp.zeros((1, HP), jnp.float32)
    c = jnp.zeros((1, HP), jnp.float32)
    out_acc = blin_ref[...]                          # (1, OPAD), start at bias

    # Statically unrolled recurrence (S is small and fixed).
    for t in range(S):
        gates = xw[t:t + 1, :] + jnp.dot(h, whh,
                                         preferred_element_type=jnp.float32)
        # Lane-aligned full-vreg gate slices (gate-major, each HP=128 wide).
        i_g = jax.nn.sigmoid(gates[:, 0 * HP:1 * HP])
        f_g = jax.nn.sigmoid(gates[:, 1 * HP:2 * HP])
        g_g = jnp.tanh(gates[:, 2 * HP:3 * HP])
        o_g = jax.nn.sigmoid(gates[:, 3 * HP:4 * HP])
        c = f_g * c + i_g * g_g
        h = o_g * jnp.tanh(c)
        # Fused linear head: accumulate this timestep's contribution.
        out_acc = out_acc + jnp.dot(h, wlin[t],
                                    preferred_element_type=jnp.float32)

    out_ref[...] = out_acc


def prepare_params(w_ih, w_hh, b_ih, b_hh, w_lin, b_lin, seq_len):
    """One-time layout prep: transpose, fuse biases, gate-major lane padding.

    PyTorch conventions: w_ih (4H, I), w_hh (4H, H), b_ih/b_hh (4H,),
    w_lin (O, S*H), b_lin (O,). Gate order i, f, g, o.
    """
    H = w_hh.shape[1]
    I = w_ih.shape[1]
    O = w_lin.shape[0]
    S = seq_len
    assert H <= HP and O <= OPAD

    wih_t = jnp.asarray(w_ih, jnp.float32).T          # (I, 4H)
    whh_t = jnp.asarray(w_hh, jnp.float32).T          # (H, 4H)
    b = (jnp.asarray(b_ih, jnp.float32)
         + jnp.asarray(b_hh, jnp.float32)).reshape(1, 4 * H)

    def pad_gate_cols(w):                             # (rows, 4H) -> (rows, 4*HP)
        rows = w.shape[0]
        w4 = w.reshape(rows, 4, H)
        w4 = jnp.pad(w4, ((0, 0), (0, 0), (0, HP - H)))
        return w4.reshape(rows, 4 * HP)

    wih_p = pad_gate_cols(wih_t)                                    # (I, 4HP)
    whh_p = jnp.pad(pad_gate_cols(whh_t), ((0, HP - H), (0, 0)))    # (HP, 4HP)
    b_p = pad_gate_cols(b)                                          # (1, 4HP)

    # Linear head, split per timestep: w_lin.T[t*H + j, o] -> wlin3[t, j, o].
    wlin3 = jnp.asarray(w_lin, jnp.float32).T.reshape(S, H, O)
    wlin_p = jnp.pad(wlin3, ((0, 0), (0, HP - H), (0, OPAD - O)))   # (S, HP, OPAD)
    blin_p = jnp.pad(jnp.asarray(b_lin, jnp.float32).reshape(1, O),
                     ((0, 0), (0, OPAD - O)))                       # (1, OPAD)

    return wih_p, whh_p, b_p, wlin_p, blin_p, O


def lstm_forward(x, prepared):
    """x: (seq, 1, input_size). `prepared` from prepare_params (done once)."""
    wih_p, whh_p, b_p, wlin_p, blin_p, O = prepared
    S, B, I = x.shape
    assert B == 1
    x2d = x.reshape(S, I).astype(jnp.float32)

    vmem = pl.BlockSpec(memory_space=pltpu.MemorySpace.VMEM)
    out_padded = pl.pallas_call(
        lstm_kernel,
        out_shape=jax.ShapeDtypeStruct((1, OPAD), jnp.float32),
        in_specs=[vmem] * 6,
        out_specs=vmem,
    )(x2d, wih_p, whh_p, b_p, wlin_p, blin_p)
    return out_padded[:, :O]


def lstm_reference(x, w_ih, w_hh, b_ih, b_hh, w_lin, b_lin):
    """Pure-JAX reference matching PyTorch nn.LSTM + nn.Linear."""
    S, _, I = x.shape
    H = w_hh.shape[1]
    h = jnp.zeros((1, H), jnp.float32)
    c = jnp.zeros((1, H), jnp.float32)
    outs = []
    for t in range(S):
        x_t = x[t].astype(jnp.float32)                    # (1, I)
        gates = x_t @ w_ih.T + b_ih + h @ w_hh.T + b_hh   # (1, 4H)
        i_g = jax.nn.sigmoid(gates[:, 0 * H:1 * H])
        f_g = jax.nn.sigmoid(gates[:, 1 * H:2 * H])
        g_g = jnp.tanh(gates[:, 2 * H:3 * H])
        o_g = jax.nn.sigmoid(gates[:, 3 * H:4 * H])
        c = f_g * c + i_g * g_g
        h = o_g * jnp.tanh(c)
        outs.append(h)
    lstm_out = jnp.stack(outs, axis=0)                    # (S, 1, H)
    flat = lstm_out.reshape(1, -1)
    return flat @ w_lin.T + b_lin


if __name__ == "__main__":
    # Small shapes consistent with the module's forward:
    #   seq_len (= n_input) ties the LSTM output to the linear layer fan-in.
    INPUT_SIZE = 4
    HIDDEN = 32
    N_INPUT = 8        # seq_len
    OUTPUT_SIZE = 3

    key = jax.random.PRNGKey(0)
    kx, k1, k2, k3, k4, k5, k6 = jax.random.split(key, 7)

    # PyTorch-style uniform(-1/sqrt(H), 1/sqrt(H)) init for LSTM,
    # uniform(-1/sqrt(fan_in), ..) for Linear.
    k_lstm = 1.0 / jnp.sqrt(HIDDEN)
    k_lin = 1.0 / jnp.sqrt(HIDDEN * N_INPUT)
    w_ih = jax.random.uniform(k1, (4 * HIDDEN, INPUT_SIZE), jnp.float32, -k_lstm, k_lstm)
    w_hh = jax.random.uniform(k2, (4 * HIDDEN, HIDDEN), jnp.float32, -k_lstm, k_lstm)
    b_ih = jax.random.uniform(k3, (4 * HIDDEN,), jnp.float32, -k_lstm, k_lstm)
    b_hh = jax.random.uniform(k4, (4 * HIDDEN,), jnp.float32, -k_lstm, k_lstm)
    w_lin = jax.random.uniform(k5, (OUTPUT_SIZE, HIDDEN * N_INPUT), jnp.float32, -k_lin, k_lin)
    b_lin = jax.random.uniform(k6, (OUTPUT_SIZE,), jnp.float32, -k_lin, k_lin)

    x = jax.random.normal(kx, (N_INPUT, 1, INPUT_SIZE), jnp.float32)

    # One-time parameter layout prep (transpose / pad / fuse biases).
    prepared = jax.tree_util.tree_map(
        lambda a: jax.block_until_ready(a) if isinstance(a, jax.Array) else a,
        prepare_params(w_ih, w_hh, b_ih, b_hh, w_lin, b_lin, N_INPUT))

    pred = lstm_forward(x, prepared)
    pred = jax.block_until_ready(pred)

    ref = lstm_reference(x, w_ih, w_hh, b_ih, b_hh, w_lin, b_lin)
    assert pred.shape == (1, OUTPUT_SIZE)
    assert jnp.allclose(pred, ref, atol=1e-4, rtol=1e-4), (pred, ref)

    print("KERNEL_OK")
</pallas_src>

<mosaic_0001>
module attributes {stable_mosaic.version = 11 : i64} {
  func.func @lstm_kernel(%arg0: memref<8x4xf32, #tpu.memory_space<vmem>>, %arg1: memref<4x512xf32, #tpu.memory_space<vmem>>, %arg2: memref<128x512xf32, #tpu.memory_space<vmem>>, %arg3: memref<1x512xf32, #tpu.memory_space<vmem>>, %arg4: memref<8x128x128xf32, #tpu.memory_space<vmem>>, %arg5: memref<1x128xf32, #tpu.memory_space<vmem>>, %arg6: memref<1x128xf32, #tpu.memory_space<vmem>>) attributes {dimension_semantics = [], scalar_prefetch = 0 : i64, scratch_operands = 0 : i64, tpu.core_type = #tpu.core_type<tc>} {
    %c0 = arith.constant 0 : index
    %c0_0 = arith.constant 0 : index
    %0 = vector.load %arg0[%c0, %c0_0] : memref<8x4xf32, #tpu.memory_space<vmem>>, vector<8x4xf32>
    %c0_1 = arith.constant 0 : index
    %c0_2 = arith.constant 0 : index
    %1 = vector.load %arg1[%c0_1, %c0_2] : memref<4x512xf32, #tpu.memory_space<vmem>>, vector<4x512xf32>
    %cst = arith.constant dense<0.000000e+00> : vector<8x512xf32>
    %2 = tpu.matmul %0, %1, %cst {dimension_numbers = #tpu.dot_dimension_numbers<[1], [0], [0], [1], [0, 0, 1, 1], [], []>} : vector<8x4xf32>, vector<4x512xf32>, vector<8x512xf32> -> vector<8x512xf32>
    %c0_3 = arith.constant 0 : index
    %c0_4 = arith.constant 0 : index
    %3 = vector.load %arg3[%c0_3, %c0_4] : memref<1x512xf32, #tpu.memory_space<vmem>>, vector<1x512xf32>
    %4 = vector.broadcast %3 : vector<1x512xf32> to vector<8x512xf32>
    %5 = arith.addf %2, %4 : vector<8x512xf32>
    %c0_5 = arith.constant 0 : index
    %c0_6 = arith.constant 0 : index
    %6 = vector.load %arg2[%c0_5, %c0_6] : memref<128x512xf32, #tpu.memory_space<vmem>>, vector<128x512xf32>
    %c0_7 = arith.constant 0 : index
    %c0_8 = arith.constant 0 : index
    %c0_9 = arith.constant 0 : index
    %7 = vector.load %arg4[%c0_7, %c0_8, %c0_9] : memref<8x128x128xf32, #tpu.memory_space<vmem>>, vector<8x128x128xf32>
    %cst_10 = arith.constant 0.000000e+00 : f32
    %8 = vector.broadcast %cst_10 : f32 to vector<1x128xf32>
    %cst_11 = arith.constant 0.000000e+00 : f32
    %9 = vector.broadcast %cst_11 : f32 to vector<1x128xf32>
    %c0_12 = arith.constant 0 : index
    %c0_13 = arith.constant 0 : index
    %10 = vector.load %arg5[%c0_12, %c0_13] : memref<1x128xf32, #tpu.memory_space<vmem>>, vector<1x128xf32>
    %11 = vector.extract_strided_slice %5 {offsets = [0, 0], sizes = [1, 512], strides = [1, 1]} : vector<8x512xf32> to vector<1x512xf32>
    %cst_14 = arith.constant dense<0.000000e+00> : vector<1x512xf32>
    %12 = tpu.matmul %8, %6, %cst_14 {dimension_numbers = #tpu.dot_dimension_numbers<[1], [0], [0], [1], [0, 0, 1, 1], [], []>} : vector<1x128xf32>, vector<128x512xf32>, vector<1x512xf32> -> vector<1x512xf32>
    %13 = arith.addf %11, %12 : vector<1x512xf32>
    %14 = vector.extract_strided_slice %13 {offsets = [0, 0], sizes = [1, 128], strides = [1, 1]} : vector<1x512xf32> to vector<1x128xf32>
    %15 = arith.negf %14 : vector<1x128xf32>
    %16 = math.exp %15 : vector<1x128xf32>
    %cst_15 = arith.constant 1.000000e+00 : f32
    %17 = vector.broadcast %cst_15 : f32 to vector<1x128xf32>
    %18 = arith.addf %17, %16 : vector<1x128xf32>
    %19 = arith.divf %17, %18 : vector<1x128xf32>
    %20 = vector.extract_strided_slice %13 {offsets = [0, 128], sizes = [1, 128], strides = [1, 1]} : vector<1x512xf32> to vector<1x128xf32>
    %21 = arith.negf %20 : vector<1x128xf32>
    %22 = math.exp %21 : vector<1x128xf32>
    %cst_16 = arith.constant 1.000000e+00 : f32
    %23 = vector.broadcast %cst_16 : f32 to vector<1x128xf32>
    %24 = arith.addf %23, %22 : vector<1x128xf32>
    %25 = arith.divf %23, %24 : vector<1x128xf32>
    %26 = vector.extract_strided_slice %13 {offsets = [0, 256], sizes = [1, 128], strides = [1, 1]} : vector<1x512xf32> to vector<1x128xf32>
    %27 = math.tanh %26 : vector<1x128xf32>
    %28 = vector.extract_strided_slice %13 {offsets = [0, 384], sizes = [1, 128], strides = [1, 1]} : vector<1x512xf32> to vector<1x128xf32>
    %29 = arith.negf %28 : vector<1x128xf32>
    %30 = math.exp %29 : vector<1x128xf32>
    %cst_17 = arith.constant 1.000000e+00 : f32
    %31 = vector.broadcast %cst_17 : f32 to vector<1x128xf32>
    %32 = arith.addf %31, %30 : vector<1x128xf32>
    %33 = arith.divf %31, %32 : vector<1x128xf32>
    %34 = arith.mulf %25, %9 : vector<1x128xf32>
    %35 = arith.mulf %19, %27 : vector<1x128xf32>
    %36 = arith.addf %34, %35 : vector<1x128xf32>
    %37 = math.tanh %36 : vector<1x128xf32>
    %38 = arith.mulf %33, %37 : vector<1x128xf32>
    %39 = vector.extract_strided_slice %7 {offsets = [0, 0, 0], sizes = [1, 128, 128], strides = [1, 1, 1]} : vector<8x128x128xf32> to vector<1x128x128xf32>
    %40 = vector.shape_cast %39 : vector<1x128x128xf32> to vector<128x128xf32>
    %cst_18 = arith.constant dense<0.000000e+00> : vector<1x128xf32>
    %41 = tpu.matmul %38, %40, %cst_18 {dimension_numbers = #tpu.dot_dimension_numbers<[1], [0], [0], [1], [0, 0, 1, 1], [], []>} : vector<1x128xf32>, vector<128x128xf32>, vector<1x128xf32> -> vector<1x128xf32>
    %42 = arith.addf %10, %41 : vector<1x128xf32>
    %43 = vector.extract_strided_slice %5 {offsets = [1, 0], sizes = [1, 512], strides = [1, 1]} : vector<8x512xf32> to vector<1x512xf32>
    %cst_19 = arith.constant dense<0.000000e+00> : vector<1x512xf32>
    %44 = tpu.matmul %38, %6, %cst_19 {dimension_numbers = #tpu.dot_dimension_numbers<[1], [0], [0], [1], [0, 0, 1, 1], [], []>} : vector<1x128xf32>, vector<128x512xf32>, vector<1x512xf32> -> vector<1x512xf32>
    %45 = arith.addf %43, %44 : vector<1x512xf32>
    %46 = vector.extract_strided_slice %45 {offsets = [0, 0], sizes = [1, 128], strides = [1, 1]} : vector<1x512xf32> to vector<1x128xf32>
    %47 = arith.negf %46 : vector<1x128xf32>
    %48 = math.exp %47 : vector<1x128xf32>
    %cst_20 = arith.constant 1.000000e+00 : f32
    %49 = vector.broadcast %cst_20 : f32 to vector<1x128xf32>
    %50 = arith.addf %49, %48 : vector<1x128xf32>
    %51 = arith.divf %49, %50 : vector<1x128xf32>
    %52 = vector.extract_strided_slice %45 {offsets = [0, 128], sizes = [1, 128], strides = [1, 1]} : vector<1x512xf32> to vector<1x128xf32>
    %53 = arith.negf %52 : vector<1x128xf32>
    %54 = math.exp %53 : vector<1x128xf32>
    %cst_21 = arith.constant 1.000000e+00 : f32
    %55 = vector.broadcast %cst_21 : f32 to vector<1x128xf32>
    %56 = arith.addf %55, %54 : vector<1x128xf32>
    %57 = arith.divf %55, %56 : vector<1x128xf32>
    %58 = vector.extract_strided_slice %45 {offsets = [0, 256], sizes = [1, 128], strides = [1, 1]} : vector<1x512xf32> to vector<1x128xf32>
    %59 = math.tanh %58 : vector<1x128xf32>
    %60 = vector.extract_strided_slice %45 {offsets = [0, 384], sizes = [1, 128], strides = [1, 1]} : vector<1x512xf32> to vector<1x128xf32>
    %61 = arith.negf %60 : vector<1x128xf32>
    %62 = math.exp %61 : vector<1x128xf32>
    %cst_22 = arith.constant 1.000000e+00 : f32
    %63 = vector.broadcast %cst_22 : f32 to vector<1x128xf32>
    %64 = arith.addf %63, %62 : vector<1x128xf32>
    %65 = arith.divf %63, %64 : vector<1x128xf32>
    %66 = arith.mulf %57, %36 : vector<1x128xf32>
    %67 = arith.mulf %51, %59 : vector<1x128xf32>
    %68 = arith.addf %66, %67 : vector<1x128xf32>
    %69 = math.tanh %68 : vector<1x128xf32>
    %70 = arith.mulf %65, %69 : vector<1x128xf32>
    %71 = vector.extract_strided_slice %7 {offsets = [1, 0, 0], sizes = [1, 128, 128], strides = [1, 1, 1]} : vector<8x128x128xf32> to vector<1x128x128xf32>
    %72 = vector.shape_cast %71 : vector<1x128x128xf32> to vector<128x128xf32>
    %cst_23 = arith.constant dense<0.000000e+00> : vector<1x128xf32>
    %73 = tpu.matmul %70, %72, %cst_23 {dimension_numbers = #tpu.dot_dimension_numbers<[1], [0], [0], [1], [0, 0, 1, 1], [], []>} : vector<1x128xf32>, vector<128x128xf32>, vector<1x128xf32> -> vector<1x128xf32>
    %74 = arith.addf %42, %73 : vector<1x128xf32>
    %75 = vector.extract_strided_slice %5 {offsets = [2, 0], sizes = [1, 512], strides = [1, 1]} : vector<8x512xf32> to vector<1x512xf32>
    %cst_24 = arith.constant dense<0.000000e+00> : vector<1x512xf32>
    %76 = tpu.matmul %70, %6, %cst_24 {dimension_numbers = #tpu.dot_dimension_numbers<[1], [0], [0], [1], [0, 0, 1, 1], [], []>} : vector<1x128xf32>, vector<128x512xf32>, vector<1x512xf32> -> vector<1x512xf32>
    %77 = arith.addf %75, %76 : vector<1x512xf32>
    %78 = vector.extract_strided_slice %77 {offsets = [0, 0], sizes = [1, 128], strides = [1, 1]} : vector<1x512xf32> to vector<1x128xf32>
    %79 = arith.negf %78 : vector<1x128xf32>
    %80 = math.exp %79 : vector<1x128xf32>
    %cst_25 = arith.constant 1.000000e+00 : f32
    %81 = vector.broadcast %cst_25 : f32 to vector<1x128xf32>
    %82 = arith.addf %81, %80 : vector<1x128xf32>
    %83 = arith.divf %81, %82 : vector<1x128xf32>
    %84 = vector.extract_strided_slice %77 {offsets = [0, 128], sizes = [1, 128], strides = [1, 1]} : vector<1x512xf32> to vector<1x128xf32>
    %85 = arith.negf %84 : vector<1x128xf32>
    %86 = math.exp %85 : vector<1x128xf32>
    %cst_26 = arith.constant 1.000000e+00 : f32
    %87 = vector.broadcast %cst_26 : f32 to vector<1x128xf32>
    %88 = arith.addf %87, %86 : vector<1x128xf32>
    %89 = arith.divf %87, %88 : vector<1x128xf32>
    %90 = vector.extract_strided_slice %77 {offsets = [0, 256], sizes = [1, 128], strides = [1, 1]} : vector<1x512xf32> to vector<1x128xf32>
    %91 = math.tanh %90 : vector<1x128xf32>
    %92 = vector.extract_strided_slice %77 {offsets = [0, 384], sizes = [1, 128], strides = [1, 1]} : vector<1x512xf32> to vector<1x128xf32>
    %93 = arith.negf %92 : vector<1x128xf32>
    %94 = math.exp %93 : vector<1x128xf32>
    %cst_27 = arith.constant 1.000000e+00 : f32
    %95 = vector.broadcast %cst_27 : f32 to vector<1x128xf32>
    %96 = arith.addf %95, %94 : vector<1x128xf32>
    %97 = arith.divf %95, %96 : vector<1x128xf32>
    %98 = arith.mulf %89, %68 : vector<1x128xf32>
    %99 = arith.mulf %83, %91 : vector<1x128xf32>
    %100 = arith.addf %98, %99 : vector<1x128xf32>
    %101 = math.tanh %100 : vector<1x128xf32>
    %102 = arith.mulf %97, %101 : vector<1x128xf32>
    %103 = vector.extract_strided_slice %7 {offsets = [2, 0, 0], sizes = [1, 128, 128], strides = [1, 1, 1]} : vector<8x128x128xf32> to vector<1x128x128xf32>
    %104 = vector.shape_cast %103 : vector<1x128x128xf32> to vector<128x128xf32>
    %cst_28 = arith.constant dense<0.000000e+00> : vector<1x128xf32>
    %105 = tpu.matmul %102, %104, %cst_28 {dimension_numbers = #tpu.dot_dimension_numbers<[1], [0], [0], [1], [0, 0, 1, 1], [], []>} : vector<1x128xf32>, vector<128x128xf32>, vector<1x128xf32> -> vector<1x128xf32>
    %106 = arith.addf %74, %105 : vector<1x128xf32>
    %107 = vector.extract_strided_slice %5 {offsets = [3, 0], sizes = [1, 512], strides = [1, 1]} : vector<8x512xf32> to vector<1x512xf32>
    %cst_29 = arith.constant dense<0.000000e+00> : vector<1x512xf32>
    %108 = tpu.matmul %102, %6, %cst_29 {dimension_numbers = #tpu.dot_dimension_numbers<[1], [0], [0], [1], [0, 0, 1, 1], [], []>} : vector<1x128xf32>, vector<128x512xf32>, vector<1x512xf32> -> vector<1x512xf32>
    %109 = arith.addf %107, %108 : vector<1x512xf32>
    %110 = vector.extract_strided_slice %109 {offsets = [0, 0], sizes = [1, 128], strides = [1, 1]} : vector<1x512xf32> to vector<1x128xf32>
    %111 = arith.negf %110 : vector<1x128xf32>
    %112 = math.exp %111 : vector<1x128xf32>
    %cst_30 = arith.constant 1.000000e+00 : f32
    %113 = vector.broadcast %cst_30 : f32 to vector<1x128xf32>
    %114 = arith.addf %113, %112 : vector<1x128xf32>
    %115 = arith.divf %113, %114 : vector<1x128xf32>
    %116 = vector.extract_strided_slice %109 {offsets = [0, 128], sizes = [1, 128], strides = [1, 1]} : vector<1x512xf32> to vector<1x128xf32>
    %117 = arith.negf %116 : vector<1x128xf32>
    %118 = math.exp %117 : vector<1x128xf32>
    %cst_31 = arith.constant 1.000000e+00 : f32
    %119 = vector.broadcast %cst_31 : f32 to vector<1x128xf32>
    %120 = arith.addf %119, %118 : vector<1x128xf32>
    %121 = arith.divf %119, %120 : vector<1x128xf32>
    %122 = vector.extract_strided_slice %109 {offsets = [0, 256], sizes = [1, 128], strides = [1, 1]} : vector<1x512xf32> to vector<1x128xf32>
    %123 = math.tanh %122 : vector<1x128xf32>
    %124 = vector.extract_strided_slice %109 {offsets = [0, 384], sizes = [1, 128], strides = [1, 1]} : vector<1x512xf32> to vector<1x128xf32>
    %125 = arith.negf %124 : vector<1x128xf32>
    %126 = math.exp %125 : vector<1x128xf32>
    %cst_32 = arith.constant 1.000000e+00 : f32
    %127 = vector.broadcast %cst_32 : f32 to vector<1x128xf32>
    %128 = arith.addf %127, %126 : vector<1x128xf32>
    %129 = arith.divf %127, %128 : vector<1x128xf32>
    %130 = arith.mulf %121, %100 : vector<1x128xf32>
    %131 = arith.mulf %115, %123 : vector<1x128xf32>
    %132 = arith.addf %130, %131 : vector<1x128xf32>
    %133 = math.tanh %132 : vector<1x128xf32>
    %134 = arith.mulf %129, %133 : vector<1x128xf32>
    %135 = vector.extract_strided_slice %7 {offsets = [3, 0, 0], sizes = [1, 128, 128], strides = [1, 1, 1]} : vector<8x128x128xf32> to vector<1x128x128xf32>
    %136 = vector.shape_cast %135 : vector<1x128x128xf32> to vector<128x128xf32>
    %cst_33 = arith.constant dense<0.000000e+00> : vector<1x128xf32>
    %137 = tpu.matmul %134, %136, %cst_33 {dimension_numbers = #tpu.dot_dimension_numbers<[1], [0], [0], [1], [0, 0, 1, 1], [], []>} : vector<1x128xf32>, vector<128x128xf32>, vector<1x128xf32> -> vector<1x128xf32>
    %138 = arith.addf %106, %137 : vector<1x128xf32>
    %139 = vector.extract_strided_slice %5 {offsets = [4, 0], sizes = [1, 512], strides = [1, 1]} : vector<8x512xf32> to vector<1x512xf32>
    %cst_34 = arith.constant dense<0.000000e+00> : vector<1x512xf32>
    %140 = tpu.matmul %134, %6, %cst_34 {dimension_numbers = #tpu.dot_dimension_numbers<[1], [0], [0], [1], [0, 0, 1, 1], [], []>} : vector<1x128xf32>, vector<128x512xf32>, vector<1x512xf32> -> vector<1x512xf32>
    %141 = arith.addf %139, %140 : vector<1x512xf32>
    %142 = vector.extract_strided_slice %141 {offsets = [0, 0], sizes = [1, 128], strides = [1, 1]} : vector<1x512xf32> to vector<1x128xf32>
    %143 = arith.negf %142 : vector<1x128xf32>
    %144 = math.exp %143 : vector<1x128xf32>
    %cst_35 = arith.constant 1.000000e+00 : f32
    %145 = vector.broadcast %cst_35 : f32 to vector<1x128xf32>
    %146 = arith.addf %145, %144 : vector<1x128xf32>
    %147 = arith.divf %145, %146 : vector<1x128xf32>
    %148 = vector.extract_strided_slice %141 {offsets = [0, 128], sizes = [1, 128], strides = [1, 1]} : vector<1x512xf32> to vector<1x128xf32>
    %149 = arith.negf %148 : vector<1x128xf32>
    %150 = math.exp %149 : vector<1x128xf32>
    %cst_36 = arith.constant 1.000000e+00 : f32
    %151 = vector.broadcast %cst_36 : f32 to vector<1x128xf32>
    %152 = arith.addf %151, %150 : vector<1x128xf32>
    %153 = arith.divf %151, %152 : vector<1x128xf32>
    %154 = vector.extract_strided_slice %141 {offsets = [0, 256], sizes = [1, 128], strides = [1, 1]} : vector<1x512xf32> to vector<1x128xf32>
    %155 = math.tanh %154 : vector<1x128xf32>
    %156 = vector.extract_strided_slice %141 {offsets = [0, 384], sizes = [1, 128], strides = [1, 1]} : vector<1x512xf32> to vector<1x128xf32>
    %157 = arith.negf %156 : vector<1x128xf32>
    %158 = math.exp %157 : vector<1x128xf32>
    %cst_37 = arith.constant 1.000000e+00 : f32
    %159 = vector.broadcast %cst_37 : f32 to vector<1x128xf32>
    %160 = arith.addf %159, %158 : vector<1x128xf32>
    %161 = arith.divf %159, %160 : vector<1x128xf32>
    %162 = arith.mulf %153, %132 : vector<1x128xf32>
    %163 = arith.mulf %147, %155 : vector<1x128xf32>
    %164 = arith.addf %162, %163 : vector<1x128xf32>
    %165 = math.tanh %164 : vector<1x128xf32>
    %166 = arith.mulf %161, %165 : vector<1x128xf32>
    %167 = vector.extract_strided_slice %7 {offsets = [4, 0, 0], sizes = [1, 128, 128], strides = [1, 1, 1]} : vector<8x128x128xf32> to vector<1x128x128xf32>
    %168 = vector.shape_cast %167 : vector<1x128x128xf32> to vector<128x128xf32>
    %cst_38 = arith.constant dense<0.000000e+00> : vector<1x128xf32>
    %169 = tpu.matmul %166, %168, %cst_38 {dimension_numbers = #tpu.dot_dimension_numbers<[1], [0], [0], [1], [0, 0, 1, 1], [], []>} : vector<1x128xf32>, vector<128x128xf32>, vector<1x128xf32> -> vector<1x128xf32>
    %170 = arith.addf %138, %169 : vector<1x128xf32>
    %171 = vector.extract_strided_slice %5 {offsets = [5, 0], sizes = [1, 512], strides = [1, 1]} : vector<8x512xf32> to vector<1x512xf32>
    %cst_39 = arith.constant dense<0.000000e+00> : vector<1x512xf32>
    %172 = tpu.matmul %166, %6, %cst_39 {dimension_numbers = #tpu.dot_dimension_numbers<[1], [0], [0], [1], [0, 0, 1, 1], [], []>} : vector<1x128xf32>, vector<128x512xf32>, vector<1x512xf32> -> vector<1x512xf32>
    %173 = arith.addf %171, %172 : vector<1x512xf32>
    %174 = vector.extract_strided_slice %173 {offsets = [0, 0], sizes = [1, 128], strides = [1, 1]} : vector<1x512xf32> to vector<1x128xf32>
    %175 = arith.negf %174 : vector<1x128xf32>
    %176 = math.exp %175 : vector<1x128xf32>
    %cst_40 = arith.constant 1.000000e+00 : f32
    %177 = vector.broadcast %cst_40 : f32 to vector<1x128xf32>
    %178 = arith.addf %177, %176 : vector<1x128xf32>
    %179 = arith.divf %177, %178 : vector<1x128xf32>
    %180 = vector.extract_strided_slice %173 {offsets = [0, 128], sizes = [1, 128], strides = [1, 1]} : vector<1x512xf32> to vector<1x128xf32>
    %181 = arith.negf %180 : vector<1x128xf32>
    %182 = math.exp %181 : vector<1x128xf32>
    %cst_41 = arith.constant 1.000000e+00 : f32
    %183 = vector.broadcast %cst_41 : f32 to vector<1x128xf32>
    %184 = arith.addf %183, %182 : vector<1x128xf32>
    %185 = arith.divf %183, %184 : vector<1x128xf32>
    %186 = vector.extract_strided_slice %173 {offsets = [0, 256], sizes = [1, 128], strides = [1, 1]} : vector<1x512xf32> to vector<1x128xf32>
    %187 = math.tanh %186 : vector<1x128xf32>
    %188 = vector.extract_strided_slice %173 {offsets = [0, 384], sizes = [1, 128], strides = [1, 1]} : vector<1x512xf32> to vector<1x128xf32>
    %189 = arith.negf %188 : vector<1x128xf32>
    %190 = math.exp %189 : vector<1x128xf32>
    %cst_42 = arith.constant 1.000000e+00 : f32
    %191 = vector.broadcast %cst_42 : f32 to vector<1x128xf32>
    %192 = arith.addf %191, %190 : vector<1x128xf32>
    %193 = arith.divf %191, %192 : vector<1x128xf32>
    %194 = arith.mulf %185, %164 : vector<1x128xf32>
    %195 = arith.mulf %179, %187 : vector<1x128xf32>
    %196 = arith.addf %194, %195 : vector<1x128xf32>
    %197 = math.tanh %196 : vector<1x128xf32>
    %198 = arith.mulf %193, %197 : vector<1x128xf32>
    %199 = vector.extract_strided_slice %7 {offsets = [5, 0, 0], sizes = [1, 128, 128], strides = [1, 1, 1]} : vector<8x128x128xf32> to vector<1x128x128xf32>
    %200 = vector.shape_cast %199 : vector<1x128x128xf32> to vector<128x128xf32>
    %cst_43 = arith.constant dense<0.000000e+00> : vector<1x128xf32>
    %201 = tpu.matmul %198, %200, %cst_43 {dimension_numbers = #tpu.dot_dimension_numbers<[1], [0], [0], [1], [0, 0, 1, 1], [], []>} : vector<1x128xf32>, vector<128x128xf32>, vector<1x128xf32> -> vector<1x128xf32>
    %202 = arith.addf %170, %201 : vector<1x128xf32>
    %203 = vector.extract_strided_slice %5 {offsets = [6, 0], sizes = [1, 512], strides = [1, 1]} : vector<8x512xf32> to vector<1x512xf32>
    %cst_44 = arith.constant dense<0.000000e+00> : vector<1x512xf32>
    %204 = tpu.matmul %198, %6, %cst_44 {dimension_numbers = #tpu.dot_dimension_numbers<[1], [0], [0], [1], [0, 0, 1, 1], [], []>} : vector<1x128xf32>, vector<128x512xf32>, vector<1x512xf32> -> vector<1x512xf32>
    %205 = arith.addf %203, %204 : vector<1x512xf32>
    %206 = vector.extract_strided_slice %205 {offsets = [0, 0], sizes = [1, 128], strides = [1, 1]} : vector<1x512xf32> to vector<1x128xf32>
    %207 = arith.negf %206 : vector<1x128xf32>
    %208 = math.exp %207 : vector<1x128xf32>
    %cst_45 = arith.constant 1.000000e+00 : f32
    %209 = vector.broadcast %cst_45 : f32 to vector<1x128xf32>
    %210 = arith.addf %209, %208 : vector<1x128xf32>
    %211 = arith.divf %209, %210 : vector<1x128xf32>
    %212 = vector.extract_strided_slice %205 {offsets = [0, 128], sizes = [1, 128], strides = [1, 1]} : vector<1x512xf32> to vector<1x128xf32>
    %213 = arith.negf %212 : vector<1x128xf32>
    %214 = math.exp %213 : vector<1x128xf32>
    %cst_46 = arith.constant 1.000000e+00 : f32
    %215 = vector.broadcast %cst_46 : f32 to vector<1x128xf32>
    %216 = arith.addf %215, %214 : vector<1x128xf32>
    %217 = arith.divf %215, %216 : vector<1x128xf32>
    %218 = vector.extract_strided_slice %205 {offsets = [0, 256], sizes = [1, 128], strides = [1, 1]} : vector<1x512xf32> to vector<1x128xf32>
    %219 = math.tanh %218 : vector<1x128xf32>
    %220 = vector.extract_strided_slice %205 {offsets = [0, 384], sizes = [1, 128], strides = [1, 1]} : vector<1x512xf32> to vector<1x128xf32>
    %221 = arith.negf %220 : vector<1x128xf32>
    %222 = math.exp %221 : vector<1x128xf32>
    %cst_47 = arith.constant 1.000000e+00 : f32
    %223 = vector.broadcast %cst_47 : f32 to vector<1x128xf32>
    %224 = arith.addf %223, %222 : vector<1x128xf32>
    %225 = arith.divf %223, %224 : vector<1x128xf32>
    %226 = arith.mulf %217, %196 : vector<1x128xf32>
    %227 = arith.mulf %211, %219 : vector<1x128xf32>
    %228 = arith.addf %226, %227 : vector<1x128xf32>
    %229 = math.tanh %228 : vector<1x128xf32>
    %230 = arith.mulf %225, %229 : vector<1x128xf32>
    %231 = vector.extract_strided_slice %7 {offsets = [6, 0, 0], sizes = [1, 128, 128], strides = [1, 1, 1]} : vector<8x128x128xf32> to vector<1x128x128xf32>
    %232 = vector.shape_cast %231 : vector<1x128x128xf32> to vector<128x128xf32>
    %cst_48 = arith.constant dense<0.000000e+00> : vector<1x128xf32>
    %233 = tpu.matmul %230, %232, %cst_48 {dimension_numbers = #tpu.dot_dimension_numbers<[1], [0], [0], [1], [0, 0, 1, 1], [], []>} : vector<1x128xf32>, vector<128x128xf32>, vector<1x128xf32> -> vector<1x128xf32>
    %234 = arith.addf %202, %233 : vector<1x128xf32>
    %235 = vector.extract_strided_slice %5 {offsets = [7, 0], sizes = [1, 512], strides = [1, 1]} : vector<8x512xf32> to vector<1x512xf32>
    %cst_49 = arith.constant dense<0.000000e+00> : vector<1x512xf32>
    %236 = tpu.matmul %230, %6, %cst_49 {dimension_numbers = #tpu.dot_dimension_numbers<[1], [0], [0], [1], [0, 0, 1, 1], [], []>} : vector<1x128xf32>, vector<128x512xf32>, vector<1x512xf32> -> vector<1x512xf32>
    %237 = arith.addf %235, %236 : vector<1x512xf32>
    %238 = vector.extract_strided_slice %237 {offsets = [0, 0], sizes = [1, 128], strides = [1, 1]} : vector<1x512xf32> to vector<1x128xf32>
    %239 = arith.negf %238 : vector<1x128xf32>
    %240 = math.exp %239 : vector<1x128xf32>
    %cst_50 = arith.constant 1.000000e+00 : f32
    %241 = vector.broadcast %cst_50 : f32 to vector<1x128xf32>
    %242 = arith.addf %241, %240 : vector<1x128xf32>
    %243 = arith.divf %241, %242 : vector<1x128xf32>
    %244 = vector.extract_strided_slice %237 {offsets = [0, 128], sizes = [1, 128], strides = [1, 1]} : vector<1x512xf32> to vector<1x128xf32>
    %245 = arith.negf %244 : vector<1x128xf32>
    %246 = math.exp %245 : vector<1x128xf32>
    %cst_51 = arith.constant 1.000000e+00 : f32
    %247 = vector.broadcast %cst_51 : f32 to vector<1x128xf32>
    %248 = arith.addf %247, %246 : vector<1x128xf32>
    %249 = arith.divf %247, %248 : vector<1x128xf32>
    %250 = vector.extract_strided_slice %237 {offsets = [0, 256], sizes = [1, 128], strides = [1, 1]} : vector<1x512xf32> to vector<1x128xf32>
    %251 = math.tanh %250 : vector<1x128xf32>
    %252 = vector.extract_strided_slice %237 {offsets = [0, 384], sizes = [1, 128], strides = [1, 1]} : vector<1x512xf32> to vector<1x128xf32>
    %253 = arith.negf %252 : vector<1x128xf32>
    %254 = math.exp %253 : vector<1x128xf32>
    %cst_52 = arith.constant 1.000000e+00 : f32
    %255 = vector.broadcast %cst_52 : f32 to vector<1x128xf32>
    %256 = arith.addf %255, %254 : vector<1x128xf32>
    %257 = arith.divf %255, %256 : vector<1x128xf32>
    %258 = arith.mulf %249, %228 : vector<1x128xf32>
    %259 = arith.mulf %243, %251 : vector<1x128xf32>
    %260 = arith.addf %258, %259 : vector<1x128xf32>
    %261 = math.tanh %260 : vector<1x128xf32>
    %262 = arith.mulf %257, %261 : vector<1x128xf32>
    %263 = vector.extract_strided_slice %7 {offsets = [7, 0, 0], sizes = [1, 128, 128], strides = [1, 1, 1]} : vector<8x128x128xf32> to vector<1x128x128xf32>
    %264 = vector.shape_cast %263 : vector<1x128x128xf32> to vector<128x128xf32>
    %cst_53 = arith.constant dense<0.000000e+00> : vector<1x128xf32>
    %265 = tpu.matmul %262, %264, %cst_53 {dimension_numbers = #tpu.dot_dimension_numbers<[1], [0], [0], [1], [0, 0, 1, 1], [], []>} : vector<1x128xf32>, vector<128x128xf32>, vector<1x128xf32> -> vector<1x128xf32>
    %266 = arith.addf %234, %265 : vector<1x128xf32>
    %c0_54 = arith.constant 0 : index
    %c0_55 = arith.constant 0 : index
    %267 = vector.load %arg6[%c0_54, %c0_55] : memref<1x128xf32, #tpu.memory_space<vmem>>, vector<1x128xf32>
    tpu.vector_store %arg6[%c0_54, %c0_55], %266 {strides = array<i32>} : memref<1x128xf32, #tpu.memory_space<vmem>>, vector<1x128xf32>,
    return
  }
}

</mosaic_0001>

<bundles_post_ra>
// kernel: tpu_custom_call.1
= control target key start
LH: loop header
LB: loop body
LE: loop exit
PB: predicated region body
PF: predicated region fallthrough
CT: control target
= control target key end

     0   :  { %11 = vsyncpa [#allocation3], 0  ;;  %s4508_s0 = inlined_call_operand.vmem [shape: f32[8,4], index: 0, kind: input, shape index: {}]   ;;  %s4509_s1 = inlined_call_operand.hbm [shape: f32[4,512], index: 1, kind: input, shape index: {}]   ;;  %s4510_s2 = inlined_call_operand.hbm [shape: f32[128,512], index: 2, kind: input, shape index: {}]   ;;  %s4511_s3 = inlined_call_operand.vmem [shape: f32[1,512], index: 3, kind: input, shape index: {}]   ;;  %s4512_s4 = inlined_call_operand.hbm [shape: f32[8,128,128], index: 4, kind: input, shape index: {}]   ;;  %s4513_s5 = inlined_call_operand.vmem [shape: f32[1,128], index: 5, kind: input, shape index: {}]   ;;  %s4514_s6 = inlined_call_operand.hbm [shape: f32[1,128], index: 6, kind: output, shape index: {}]  }
   0x1   :  { %12 = vsyncpa [#allocation6], 0 }
   0x2   :  { %13 = vsyncpa [#allocation4], 0  ;;  %s3911_s21 = smov [#allocation5]   ;;  %s3817_s25 = scalar_lea.hbm %s4510_s2, 8192 }
   0x3   :  { %s31_s22 = sshll.u32 %s3911_s21, 4  ;;  %p3818_p0 = scmp.ne.s32.totalorder %s4510_s2, %s3817_s25  ;;  %s32_s22 = int_to_ptr.vmem [resolvable:$true] %s31_s22 }
   0x4   :  { %p3821_p1 = scmp.lt.u32.totalorder %s3817_s25, %s4510_s2 }
   0x6   :  { %p3823_p2 = pnand %p3821_p1, %p3818_p0 }
   0x8   :  { %3826 = shalt.err (!%p3823_p2)
}
   0x9   :  { %s3827_s30 = scalar_lea.vmem %s32_s22, 8192  ;;  %p3832_p4 = scmp.lt.s32.totalorder %s32_s22, %s32_s22 }
   0xa   :  { %p3828_p3 = scmp.ne.s32.totalorder %s32_s22, %s3827_s30  ;;  %p3833_p5 = scmp.lt.s32.totalorder %s3827_s30, %s3827_s30 }
   0xc   :  { %p3834_p6 = por %p3833_p5, %p3832_p4 }
   0xe   :  { %p3835_p7 = pnand %p3834_p6, %p3828_p3 }
  0x10   :  { %3838 = shalt.err (!%p3835_p7)
}
  0x11   :  { %s3912_s7 = smov 512   ;;  %s3913_s8 = smov 32  }
  0x12   :  { %37 = dma.hbm_to_vmem [thread:$0]  %s4510_s2, 8192, %s32_s22, [#allocation6], %s3912_s7, %s3912_s7, %s3913_s8  }
  0x13   :  { %s3914_s11 = smov [#allocation2]   ;;  %s3915_s13 = smov [#allocation7]  }
  0x14   :  { %s22_s12 = sshll.u32 %s3914_s11, 4  ;;  %s45_s14 = sshll.u32 %s3915_s13, 4  ;;  %s23_s12 = int_to_ptr.vmem [resolvable:$true] %s22_s12  ;;  %s46_s14 = int_to_ptr.vmem [resolvable:$true] %s45_s14 }
  0x15   :  { %s3839_s17 = scalar_lea.hbm %s4509_s1, 256 }
  0x16   :  { %p3840_p8 = scmp.ne.s32.totalorder %s4509_s1, %s3839_s17  ;;  %p3843_p9 = scmp.lt.u32.totalorder %s3839_s17, %s4509_s1 }
  0x18   :  { %p3845_p10 = pnand %p3843_p9, %p3840_p8 }
  0x1a   :  { %3848 = shalt.err (!%p3845_p10)
}
  0x1b   :  { %s3849_s2 = scalar_lea.vmem %s23_s12, 256  ;;  %p3854_p12 = scmp.lt.s32.totalorder %s23_s12, %s23_s12 }
  0x1c   :  { %p3850_p11 = scmp.ne.s32.totalorder %s23_s12, %s3849_s2  ;;  %p3855_p13 = scmp.lt.s32.totalorder %s3849_s2, %s3849_s2 }
  0x1e   :  { %p3856_p0 = por %p3855_p13, %p3854_p12 }
  0x20   :  { %p3857_p1 = pnand %p3856_p0, %p3850_p11 }
  0x22   :  { %3860 = shalt.err (!%p3857_p1)
}
  0x23   :  { %25 = dma.hbm_to_vmem [thread:$0]  %s4509_s1, 256, %s23_s12, [#allocation3]  }
  0x24   :  { %s3861_s26 = scalar_lea.hbm %s4512_s4, 16384 }
  0x25   :  { %p3862_p2 = scmp.ne.s32.totalorder %s4512_s4, %s3861_s26  ;;  %p3865_p3 = scmp.lt.u32.totalorder %s3861_s26, %s4512_s4 }
  0x27   :  { %p3867_p4 = pnand %p3865_p3, %p3862_p2 }
  0x29   :  { %3870 = shalt.err (!%p3867_p4)
}
  0x2a   :  { %s3871_s7 = scalar_lea.vmem %s46_s14, 16384  ;;  %p3876_p6 = scmp.lt.s32.totalorder %s46_s14, %s46_s14 }
  0x2b   :  { %p3872_p5 = scmp.ne.s32.totalorder %s46_s14, %s3871_s7  ;;  %p3877_p7 = scmp.lt.s32.totalorder %s3871_s7, %s3871_s7 }
  0x2d   :  { %p3878_p8 = por %p3877_p7, %p3876_p6 }
  0x2f   :  { %p3879_p9 = pnand %p3878_p8, %p3872_p5 }
  0x31   :  { %3882 = shalt.err (!%p3879_p9)
}
  0x32   :  { %s3916_s1 = smov 128   ;;  %s3917_s8 = smov 8  }
  0x33   :  { %51 = dma.hbm_to_vmem [thread:$0]  %s4512_s4, 16384, %s46_s14, [#allocation6], %s3916_s1, %s3916_s1, %s3917_s8  }
  0x34   :  { %3905 = dma.done.wait [#allocation3], 256  }
  0x35   :  { %3906 = vsyncadd [#allocation3], 4294967040 }
  0x36   :  { %3907 = dma.done.wait [#allocation6], 24576  }
  0x37   :  { %3908 = vsyncadd [#allocation6], 4294942720  ;;  %v3918_v0 = vmov 0.0   ;;  %v65_v1 = vld [vmem:[#allocation2 + $0x8] sm:$0xff]  ;;  %vm96_vm0 = vcmask 1043456   ;;  %v248_v2 = vld [vmem:[#allocation5 + $0x8] sm:$0xff] }
  0x38   :  { %240 = vmatprep.mubr.f32.mxu1 %v3918_v0  ;;  %169 = vmatprep.mubr.f32.mxu0 %v3918_v0  ;;  %v91_v3 = vcombine.high %v65_v1, %v65_v1  ;;  %v252_v4 = vld [vmem:[#allocation5 + $0x28] sm:$0xff]  ;;  %v247_v5 = vld [vmem:[#allocation5] sm:$0xff]  ;;  %v63_v7 = vld [vmem:[%s4508_s0] sm:$0xff]  ;;  %vm92_vm1 = vcmask 31744   ;;  %vm3920_vm2 = vmmov 0   ;;  %s3921_s14 = smov [#allocation8]  }
  0x39   :  { %v251_v6 = vld [vmem:[#allocation5 + $0x20] sm:$0xff]  ;;  %v3998_v8 = vpack.c.bf16 %v252_v4, %v248_v2  ;;  %v256_v10 = vld [vmem:[#allocation5 + $0x48] sm:$0xff]  ;;  %v64_v24 = vld [vmem:[#allocation2] sm:$0xff]  ;;  %s2501_s15 = sshll.u32 %s3921_s14, 4  ;;  %s2502_s15 = int_to_ptr.vmem [resolvable:$true] %s2501_s15 }
  0x3a   :  { %v4000_v9 = vpack.c.bf16 %v251_v6, %v247_v5  ;;  %v260_v11 = vld [vmem:[#allocation5 + $0x68] sm:$0xff]  ;;  %2514 = vmatprep.subr.msk.mxu1 %vm96_vm0, %v91_v3  ;;  %v255_v13 = vld [vmem:[#allocation5 + $0x40] sm:$0xff]  ;;  %v90_v28 = vcombine.high %v64_v24, %v64_v24  ;;  %v250_v53 = vld [vmem:[#allocation5 + $0x18] sm:$0xff]  ;;  %s3883_s16 = scalar_lea.vmem %s2502_s15, 16  ;;  %s3887_s17 = scalar_lea.vmem %s2502_s15, 32 }
  0x3b   :  { %v4003_v12 = vpack.c.bf16 %v260_v11, %v256_v10  ;;  %v259_v14 = vld [vmem:[#allocation5 + $0x60] sm:$0xff]  ;;  %2515 = vmatpush1.msk.msra.mxu1 %vm96_vm0, %v65_v1  ;;  %v264_v15 = vld [vmem:[#allocation5 + $0x88] sm:$0xff]  ;;  %v254_v54 = vld [vmem:[#allocation5 + $0x38] sm:$0xff]  ;;  %p3884_p10 = scmp.ne.s32.totalorder %s2502_s15, %s3883_s16  ;;  %p3888_p11 = scmp.lt.s32.totalorder %s2502_s15, %s2502_s15 }
  0x3c   :  { %v268_v16 = vld [vmem:[#allocation5 + $0xa8] sm:$0xff]  ;;  %2516 = vmatmul.mubr.msk.f32.vlgmr.msra.gmra.mrb[0].mxu1 %vm92_vm1, %v63_v7  ;;  %2958 = vmatprep.subr.bf16.mxu1 %v3998_v8  ;;  %v4009_v17 = vpack.c.bf16 %v259_v14, %v255_v13  ;;  %v263_v19 = vld [vmem:[#allocation5 + $0x80] sm:$0xff]  ;;  %v4052_v56 = vpack.c.bf16 %v254_v54, %v250_v53  ;;  %v249_v57 = vld [vmem:[#allocation5 + $0x10] sm:$0xff]  ;;  %p3889_p12 = scmp.lt.s32.totalorder %s3887_s17, %s3883_s16 }
  0x3d   :  { %2960 = vmatpush1.bf16.msra.mxu1 %v4000_v9  ;;  %504 = vmatprep.mubr.f32.mxu1 %v3918_v0  ;;  %v4013_v18 = vpack.c.bf16 %v268_v16, %v264_v15  ;;  %v267_v20 = vld [vmem:[#allocation5 + $0xa0] sm:$0xff]  ;;  %v272_v21 = vld [vmem:[#allocation5 + $0xc8] sm:$0xff]  ;;  %v253_v58 = vld [vmem:[#allocation5 + $0x30] sm:$0xff] }
  0x3e   :  { %2962 = vmatprep.subr.bf16.mxu1 %v4003_v12  ;;  %v276_v22 = vld [vmem:[#allocation5 + $0xe8] sm:$0xff]  ;;  %v4016_v23 = vpack.c.bf16 %v267_v20, %v263_v19  ;;  %v271_v26 = vld [vmem:[#allocation5 + $0xc0] sm:$0xff]  ;;  %2511 = vmatprep.subr.msk.mxu0 %vm96_vm0, %v90_v28  ;;  %v258_v59 = vld [vmem:[#allocation5 + $0x58] sm:$0xff]  ;;  %v4055_v61 = vpack.c.bf16 %v253_v58, %v249_v57  ;;  %p3890_p13 = por %p3889_p12, %p3888_p11 }
  0x3f   :  { %v4019_v25 = vpack.c.bf16 %v276_v22, %v272_v21  ;;  %v275_v27 = vld [vmem:[#allocation5 + $0xe0] sm:$0xff]  ;;  %v280_v29 = vld [vmem:[#allocation5 + $0x108] sm:$0xff]  ;;  %2512 = vmatpush1.msk.msra.mxu0 %vm96_vm0, %v64_v24  ;;  %v262_v60 = vld [vmem:[#allocation5 + $0x78] sm:$0xff] }
  0x40   :  { %v284_v30 = vld [vmem:[#allocation5 + $0x128] sm:$0xff]  ;;  %v4023_v31 = vpack.c.bf16 %v275_v27, %v271_v26  ;;  %v279_v33 = vld [vmem:[#allocation5 + $0x100] sm:$0xff]  ;;  %2513 = vmatmul.mubr.msk.f32.vlgmr.msra.gmra.mrb[0].mxu0 %vm92_vm1, %v63_v7  ;;  %v4058_v62 = vpack.c.bf16 %v262_v60, %v258_v59  ;;  %v257_v63 = vld [vmem:[#allocation5 + $0x50] sm:$0xff]  ;;  %v3919_v59 = vmov 0.0|0.0   ;;  %p3891_p0 = pnand %p3890_p13, %p3884_p10 }
  0x41   :  { %2964 = vmatpush1.bf16.msra.mxu1 %v4009_v17  ;;  %v4027_v32 = vpack.c.bf16 %v284_v30, %v280_v29  ;;  %v283_v34 = vld [vmem:[#allocation5 + $0x120] sm:$0xff]  ;;  %v288_v35 = vld [vmem:[#allocation5 + $0x148] sm:$0xff]  ;;  %v261_v1 = vld [vmem:[#allocation5 + $0x70] sm:$0xff]  ;;  %3021 = vmatprep.subr.bf16.mxu0 %v3919_v59 }
  0x42   :  { %2966 = vmatprep.subr.bf16.mxu1 %v4013_v18  ;;  %v292_v36 = vld [vmem:[#allocation5 + $0x168] sm:$0xff]  ;;  %v4031_v37 = vpack.c.bf16 %v283_v34, %v279_v33  ;;  %v287_v39 = vld [vmem:[#allocation5 + $0x140] sm:$0xff]  ;;  %v266_v2 = vld [vmem:[#allocation5 + $0x98] sm:$0xff]  ;;  %v4062_v4 = vpack.c.bf16 %v261_v1, %v257_v63  ;;  %2709 = vmatprep.mubr.msk.f32.mxu0 %vm3920_vm2, %v3918_v0 }
  0x43   :  { %v4034_v38 = vpack.c.bf16 %v292_v36, %v288_v35  ;;  %v291_v40 = vld [vmem:[#allocation5 + $0x160] sm:$0xff]  ;;  %v296_v41 = vld [vmem:[#allocation5 + $0x188] sm:$0xff]  ;;  %v270_v3 = vld [vmem:[#allocation5 + $0xb8] sm:$0xff] }
  0x44   :  { %v300_v42 = vld [vmem:[#allocation5 + $0x1a8] sm:$0xff]  ;;  %v4037_v43 = vpack.c.bf16 %v291_v40, %v287_v39  ;;  %v295_v45 = vld [vmem:[#allocation5 + $0x180] sm:$0xff]  ;;  %v4066_v5 = vpack.c.bf16 %v270_v3, %v266_v2  ;;  %v265_v6 = vld [vmem:[#allocation5 + $0x90] sm:$0xff] }
  0x45   :  { %2968 = vmatpush1.bf16.msra.mxu1 %v4016_v23  ;;  %v4040_v44 = vpack.c.bf16 %v300_v42, %v296_v41  ;;  %v299_v46 = vld [vmem:[#allocation5 + $0x1a0] sm:$0xff]  ;;  %v304_v47 = vld [vmem:[#allocation5 + $0x1c8] sm:$0xff]  ;;  %v269_v7 = vld [vmem:[#allocation5 + $0xb0] sm:$0xff] }
  0x46   :  { %2970 = vmatprep.subr.bf16.mxu1 %v4019_v25  ;;  %v308_v48 = vld [vmem:[#allocation5 + $0x1e8] sm:$0xff]  ;;  %v4043_v49 = vpack.c.bf16 %v299_v46, %v295_v45  ;;  %v303_v51 = vld [vmem:[#allocation5 + $0x1c0] sm:$0xff]  ;;  %v274_v10 = vld [vmem:[#allocation5 + $0xd8] sm:$0xff]  ;;  %v4069_v13 = vpack.c.bf16 %v269_v7, %v265_v6 }
  0x47   :  { %v4046_v50 = vpack.c.bf16 %v308_v48, %v304_v47  ;;  %v307_v52 = vld [vmem:[#allocation5 + $0x1e0] sm:$0xff]  ;;  %v278_v11 = vld [vmem:[#allocation5 + $0xf8] sm:$0xff]  ;;  %v273_v15 = vld [vmem:[#allocation5 + $0xd0] sm:$0xff] }
  0x48   :  { %v4049_v55 = vpack.c.bf16 %v307_v52, %v303_v51  ;;  %v4072_v14 = vpack.c.bf16 %v278_v11, %v274_v10  ;;  %v277_v16 = vld [vmem:[#allocation5 + $0xf0] sm:$0xff]  ;;  %v282_v19 = vld [vmem:[#allocation5 + $0x118] sm:$0xff]  ;;  %v311_v54 = vld [vmem:[#allocation7] sm:$0xff] }
  0x49   :  { %2972 = vmatpush1.bf16.msra.mxu1 %v4023_v31  ;;  %v286_v20 = vld [vmem:[#allocation5 + $0x138] sm:$0xff]  ;;  %v4075_v21 = vpack.c.bf16 %v277_v16, %v273_v15  ;;  %v281_v24 = vld [vmem:[#allocation5 + $0x110] sm:$0xff]  ;;  %v312_v57 = vld [vmem:[#allocation7 + $0x8] sm:$0xff] }
  0x4a   :  { %2974 = vmatprep.subr.bf16.mxu1 %v4027_v32  ;;  %v4078_v22 = vpack.c.bf16 %v286_v20, %v282_v19  ;;  %v285_v26 = vld [vmem:[#allocation5 + $0x130] sm:$0xff]  ;;  %v290_v27 = vld [vmem:[#allocation5 + $0x158] sm:$0xff]  ;;  %v3022_v58 = vpack.c.bf16 %v312_v57, %v311_v54  ;;  %v315_v2 = vld [vmem:[#allocation7 + $0x20] sm:$0xff] }
  0x4b   :  { %v294_v28 = vld [vmem:[#allocation5 + $0x178] sm:$0xff]  ;;  %v4081_v29 = vpack.c.bf16 %v285_v26, %v281_v24  ;;  %v289_v33 = vld [vmem:[#allocation5 + $0x150] sm:$0xff]  ;;  %v316_v3 = vld [vmem:[#allocation7 + $0x28] sm:$0xff] }
  0x4c   :  { %v4084_v30 = vpack.c.bf16 %v294_v28, %v290_v27  ;;  %v293_v34 = vld [vmem:[#allocation5 + $0x170] sm:$0xff]  ;;  %v298_v35 = vld [vmem:[#allocation5 + $0x198] sm:$0xff]  ;;  %3023 = vmatpush3.bf16.msra.mxu0 %v3022_v58  ;;  %v3028_v6 = vpack.c.bf16 %v316_v3, %v315_v2  ;;  %v319_v15 = vld [vmem:[#allocation7 + $0x40] sm:$0xff] }
  0x4d   :  { %2976 = vmatpush1.bf16.msra.mxu1 %v4031_v37  ;;  %v302_v36 = vld [vmem:[#allocation5 + $0x1b8] sm:$0xff]  ;;  %v4087_v39 = vpack.c.bf16 %v293_v34, %v289_v33  ;;  %v297_v41 = vld [vmem:[#allocation5 + $0x190] sm:$0xff]  ;;  %3024 = vmatprep.subr.bf16.mxu0 %v3919_v59  ;;  %v320_v16 = vld [vmem:[#allocation7 + $0x48] sm:$0xff] }
  0x4e   :  { %2978 = vmatprep.subr.bf16.mxu1 %v4034_v38  ;;  %v4090_v40 = vpack.c.bf16 %v302_v36, %v298_v35  ;;  %v301_v42 = vld [vmem:[#allocation5 + $0x1b0] sm:$0xff]  ;;  %v306_v45 = vld [vmem:[#allocation5 + $0x1d8] sm:$0xff]  ;;  %v3034_v19 = vpack.c.bf16 %v320_v16, %v319_v15  ;;  %v323_v27 = vld [vmem:[#allocation7 + $0x60] sm:$0xff] }
  0x4f   :  { %v310_v46 = vld [vmem:[#allocation5 + $0x1f8] sm:$0xff]  ;;  %v4093_v47 = vpack.c.bf16 %v301_v42, %v297_v41  ;;  %v305_v51 = vld [vmem:[#allocation5 + $0x1d0] sm:$0xff]  ;;  %v324_v28 = vld [vmem:[#allocation7 + $0x68] sm:$0xff] }
  0x50   :  { %v4096_v48 = vpack.c.bf16 %v310_v46, %v306_v45  ;;  %v309_v52 = vld [vmem:[#allocation5 + $0x1f0] sm:$0xff]  ;;  %v314_v63 = vld [vmem:[#allocation7 + $0x18] sm:$0xff]  ;;  %v3040_v33 = vpack.c.bf16 %v324_v28, %v323_v27 }
  0x51   :  { %2980 = vmatpush1.bf16.msra.mxu1 %v4037_v43  ;;  %v4099_v53 = vpack.c.bf16 %v309_v52, %v305_v51  ;;  %v313_v60 = vld [vmem:[#allocation7 + $0x10] sm:$0xff]  ;;  %v318_v10 = vld [vmem:[#allocation7 + $0x38] sm:$0xff]  ;;  %v68_v51 = vlaneseq }
  0x52   :  { %2982 = vmatprep.subr.bf16.mxu1 %v4040_v44  ;;  %v3025_v1 = vpack.c.bf16 %v314_v63, %v313_v60  ;;  %v317_v7 = vld [vmem:[#allocation7 + $0x30] sm:$0xff]  ;;  %v322_v24 = vld [vmem:[#allocation7 + $0x58] sm:$0xff] }
  0x53   :  { %v3031_v11 = vpack.c.bf16 %v318_v10, %v317_v7  ;;  %v321_v20 = vld [vmem:[#allocation7 + $0x50] sm:$0xff]  ;;  %v326_v35 = vld [vmem:[#allocation7 + $0x78] sm:$0xff]  ;;  %v69_v52 = vshrl.u32 %v68_v51, 7 }
  0x54   :  { %3026 = vmatpush3.bf16.msra.mxu0 %v3025_v1  ;;  %v3037_v26 = vpack.c.bf16 %v322_v24, %v321_v20  ;;  %v325_v34 = vld [vmem:[#allocation7 + $0x70] sm:$0xff] }
  0x55   :  { %2984 = vmatpush1.bf16.msra.mxu1 %v4043_v49  ;;  %3027 = vmatprep.subr.bf16.mxu0 %v3919_v59  ;;  %v3043_v36 = vpack.c.bf16 %v326_v35, %v325_v34  ;;  %v74_v54 = vsub.s32 1, %v69_v52  ;;  %v70_v57 = vsub.s32 0, %v69_v52  ;;  %v66_v58 = vld [vmem:[%s4511_s3] sm:$0xf]  ;;  %v78_v16 = vsub.s32 2, %v69_v52 }
  0x56   :  { %2986 = vmatprep.subr.bf16.mxu1 %v4046_v50 }
  0x57   :  { %v75_v60 = vrot.slane %v66_v58, %v74_v54  ;;  %v71_v1 = vrot.slane %v66_v58, %v70_v57 }
  0x58   :  { %3029 = vmatpush3.bf16.msra.mxu0 %v3028_v6 }
  0x59   :  { %2988 = vmatpush1.bf16.msra.mxu1 %v4049_v55  ;;  %3030 = vmatprep.subr.bf16.mxu0 %v3919_v59 }
  0x5a   :  { %2990 = vmatprep.subr.bf16.mxu1 %v4052_v56 }
  0x5c   :  { %505 = vmatmul.mubr.f32.vlgmr.msra.gmra.mrb[2].mxu1 %v3918_v0  ;;  %3032 = vmatpush3.bf16.msra.mxu0 %v3031_v11 }
  0x5d   :  { %2992 = vmatpush1.bf16.msra.mxu1 %v4055_v61  ;;  %575 = vmatprep.mubr.f32.mxu1 %v3918_v0 }
  0x5e   :  { %2994 = vmatprep.subr.bf16.mxu1 %v4058_v62  ;;  %3033 = vmatprep.subr.bf16.mxu0 %v3919_v59 }
  0x60   :  { %3035 = vmatpush3.bf16.msra.mxu0 %v3034_v19  ;;  %v82_v19 = vsub.s32 3, %v69_v52 }
  0x61   :  { %2996 = vmatpush1.bf16.msra.mxu1 %v4062_v4  ;;  %3036 = vmatprep.subr.bf16.mxu0 %v3919_v59 }
  0x62   :  { %2998 = vmatprep.subr.bf16.mxu1 %v4066_v5  ;;  %v83_v27 = vrot.slane %v66_v58, %v82_v19  ;;  %v329_v19 = vld [vmem:[#allocation7 + $0x90] sm:$0xff] }
  0x64   :  { %3038 = vmatpush3.bf16.msra.mxu0 %v3037_v26  ;;  %v79_v26 = vrot.slane %v66_v58, %v78_v16 }
  0x65   :  { %3000 = vmatpush1.bf16.msra.mxu1 %v4069_v13  ;;  %3039 = vmatprep.subr.bf16.mxu0 %v3919_v59 }
  0x66   :  { %3002 = vmatprep.subr.bf16.mxu1 %v4072_v14 }
  0x68   :  { %3041 = vmatpush3.bf16.msra.mxu0 %v3040_v33 }
  0x69   :  { %3004 = vmatpush1.bf16.msra.mxu1 %v4075_v21  ;;  %3042 = vmatprep.subr.bf16.mxu0 %v3919_v59 }
  0x6a   :  { %3006 = vmatprep.subr.bf16.mxu1 %v4078_v22 }
  0x6c   :  { %3044 = vmatpush3.bf16.msra.mxu0 %v3043_v36 }
  0x6d   :  { %3008 = vmatpush1.bf16.msra.mxu1 %v4081_v29  ;;  %3078 = vmatprep.subr.bf16.mxu0 %v4052_v56 }
  0x6e   :  { %3010 = vmatprep.subr.bf16.mxu1 %v4084_v30 }
  0x71   :  { %3012 = vmatpush1.bf16.msra.mxu1 %v4087_v39 }
  0x72   :  { %3014 = vmatprep.subr.bf16.mxu1 %v4090_v40 }
  0x75   :  { %3016 = vmatpush1.bf16.msra.mxu1 %v4093_v47 }
  0x76   :  { %3018 = vmatprep.subr.bf16.mxu1 %v4096_v48 }
  0x79   :  { %3020 = vmatpush1.bf16.msra.mxu1 %v4099_v53 }
  0x7a   :  { %3046 = vmatprep.subr.bf16.mxu1 %v3998_v8 }
  0x7c   :  { %576 = vmatmul.mubr.f32.vlgmr.msra.gmra.mrb[4].mxu1 %v3918_v0 }
  0x7d   :  { %3048 = vmatpush1.bf16.msra.mxu1 %v4000_v9  ;;  %745 = vmatprep.mubr.f32.mxu1 %v3918_v0 }
  0x7e   :  { %3050 = vmatprep.subr.bf16.mxu1 %v4003_v12 }
  0x81   :  { %3052 = vmatpush1.bf16.msra.mxu1 %v4009_v17 }
  0x82   :  { %3054 = vmatprep.subr.bf16.mxu1 %v4013_v18 }
  0x85   :  { %3056 = vmatpush1.bf16.msra.mxu1 %v4016_v23 }
  0x86   :  { %3058 = vmatprep.subr.bf16.mxu1 %v4019_v25 }
  0x89   :  { %3060 = vmatpush1.bf16.msra.mxu1 %v4023_v31 }
  0x8a   :  { %3062 = vmatprep.subr.bf16.mxu1 %v4027_v32 }
  0x8d   :  { %3064 = vmatpush1.bf16.msra.mxu1 %v4031_v37 }
  0x8e   :  { %3066 = vmatprep.subr.bf16.mxu1 %v4034_v38 }
  0x91   :  { %3068 = vmatpush1.bf16.msra.mxu1 %v4037_v43 }
  0x92   :  { %3070 = vmatprep.subr.bf16.mxu1 %v4040_v44 }
  0x95   :  { %3072 = vmatpush1.bf16.msra.mxu1 %v4043_v49 }
  0x96   :  { %3074 = vmatprep.subr.bf16.mxu1 %v4046_v50 }
  0x99   :  { %3076 = vmatpush1.bf16.msra.mxu1 %v4049_v55 }
  0x9a   :  { %3134 = vmatprep.subr.bf16.mxu1 %v3998_v8 }
 0x10f   :  { %v242_v41 = vpop.f32.mrb[0].mxu1 }
 0x110   :  { %v244_v42 = vpop.f32.mrb[1].mxu1  ;;  %v4142_v34 = vadd.f32 %v242_v41, %v79_v26  ;;  %v331_v26 = vld [vmem:[#allocation7 + $0xa0] sm:$0xff] }
 0x111   :  { %v4144_v35 = vadd.f32 %v244_v42, %v83_v27  ;;  %v332_v27 = vld [vmem:[#allocation7 + $0xa8] sm:$0xff] }
 0x113   :  { %v171_v45 = vpop.f32.mrb[0].mxu0 }
 0x114   :  { %v173_v46 = vpop.f32.mrb[1].mxu0  ;;  %v4138_v6 = vadd.f32 %v171_v45, %v71_v1 }
 0x115   :  { %v4136_v3 = vadd.f32 %v173_v46, %v75_v60 }
 0x12f   :  { %v506_v63 = vpop.f32.mrb[2].mxu1 }
 0x130   :  { %v508_v2 = vpop.f32.mrb[3].mxu1  ;;  %v582_v10 = vadd.f32 %v506_v63, %v4138_v6 }
 0x131   :  { %v583_v7 = vadd.f32 %v508_v2, %v4136_v3 }
 0x132   :  { %v2517_v15 = vmul.f32 -1.442695, %v582_v10 }
 0x133   :  { %v2518_v11 = vmul.f32 -1.442695, %v583_v7 }
 0x135   :  { %3689 = vpow2.f32 %v2518_v11  ;;  %v327_v11 = vld [vmem:[#allocation7 + $0x80] sm:$0xff] }
 0x136   :  { %3691 = vpow2.f32 %v2517_v15  ;;  %v328_v15 = vld [vmem:[#allocation7 + $0x88] sm:$0xff] }
 0x137   :  { %v3110_v16 = vpack.c.bf16 %v328_v15, %v327_v11 }
 0x13f   :  { %v3690_v20 = vpop.eup %3689 }
 0x140   :  { %v3692_v24 = vpop.eup %3691  ;;  %v595_v28 = vadd.f32 1.0, %v3690_v20  ;;  %v330_v20 = vld [vmem:[#allocation7 + $0x98] sm:$0xff] }
 0x141   :  { %v589_v33 = vadd.f32 1.0, %v3692_v24  ;;  %v3113_v24 = vpack.c.bf16 %v330_v20, %v329_v19 }
 0x142   :  { %3693 = vrcp.f32 %v595_v28  ;;  %v3116_v28 = vpack.c.bf16 %v332_v27, %v331_v26 }
 0x143   :  { %3695 = vrcp.f32 %v589_v33  ;;  %v333_v33 = vld [vmem:[#allocation7 + $0xb0] sm:$0xff] }
 0x14c   :  { %v3694_v54 = vpop.eup %3693 }
 0x14d   :  { %v3696_v57 = vpop.eup %3695  ;;  %v605_v60 = vmul.f32 0.0, %v3694_v54  ;;  %v337_v54 = vld [vmem:[#allocation7 + $0xd0] sm:$0xff] }
 0x14f   :  { %v577_v36 = vpop.f32.mrb[4].mxu1 }
 0x150   :  { %v584_v45 = vadd.f32 %v577_v36, %v4142_v34  ;;  %v579_v46 = vpop.f32.mrb[5].mxu1  ;;  %v334_v36 = vld [vmem:[#allocation7 + $0xb8] sm:$0xff] }
 0x151   :  { %v585_v51 = vadd.f32 %v579_v46, %v4144_v35  ;;  %v335_v46 = vld [vmem:[#allocation7 + $0xc0] sm:$0xff] }
 0x152   :  { %3697 = vtanh.f32 %v584_v45  ;;  %v3119_v45 = vpack.c.bf16 %v334_v36, %v333_v33 }
 0x153   :  { %v2519_v52 = vmul.f32 -1.442695, %v585_v51  ;;  %v336_v51 = vld [vmem:[#allocation7 + $0xc8] sm:$0xff] }
 0x155   :  { %3699 = vpow2.f32 %v2519_v52  ;;  %v3122_v52 = vpack.c.bf16 %v336_v51, %v335_v46 }
 0x15c   :  { %v3698_v58 = vpop.eup %3697 }
 0x15d   :  { %v606_v63 = vmul.f32 %v3698_v58, %v3696_v57  ;;  %v338_v57 = vld [vmem:[#allocation7 + $0xd8] sm:$0xff] }
 0x15e   :  { %v3125_v58 = vpack.c.bf16 %v338_v57, %v337_v54 }
 0x15f   :  { %v3700_v41 = vpop.eup %3699  ;;  %v4148_v1 = vadd.f32 %v606_v63, %v605_v60  ;;  %v339_v60 = vld [vmem:[#allocation7 + $0xe0] sm:$0xff]  ;;  %v340_v63 = vld [vmem:[#allocation7 + $0xe8] sm:$0xff] }
 0x160   :  { %v602_v42 = vadd.f32 1.0, %v3700_v41  ;;  %v3128_v41 = vpack.c.bf16 %v340_v63, %v339_v60 }
 0x161   :  { %3701 = vtanh.f32 %v4148_v1  ;;  %v859_v36 = vrot.slane %v4148_v1, 7 }
 0x162   :  { %3703 = vrcp.f32 %v602_v42  ;;  %v341_v42 = vld [vmem:[#allocation7 + $0xf0] sm:$0xff] }
 0x16b   :  { %v3702_v2 = vpop.eup %3701 }
 0x16c   :  { %v3704_v7 = vpop.eup %3703 }
 0x16d   :  { %v609_v10 = vmul.f32 %v3704_v7, %v3702_v2  ;;  %v342_v2 = vld [vmem:[#allocation7 + $0xf8] sm:$0xff] }
 0x16e   :  { %v3131_v7 = vpack.c.bf16 %v342_v2, %v341_v42 }
 0x16f   :  { %2710 = vmatmul.mubr.f32.vlgmr.msra.gmra.mrb[2].mxu0 %v609_v10  ;;  %746 = vmatmul.mubr.f32.vlgmr.msra.gmra.mrb[6].mxu1 %v609_v10 }
 0x170   :  { %3080 = vmatpush1.bf16.msra.mxu0 %v4055_v61  ;;  %816 = vmatprep.mubr.f32.mxu0 %v3918_v0 }
 0x171   :  { %3082 = vmatprep.subr.bf16.mxu0 %v4058_v62  ;;  %3136 = vmatpush1.bf16.msra.mxu1 %v4000_v9 }
 0x172   :  { %3138 = vmatprep.subr.bf16.mxu1 %v4003_v12  ;;  %1004 = vmatprep.mubr.f32.mxu1 %v3918_v0 }
 0x174   :  { %3084 = vmatpush1.bf16.msra.mxu0 %v4062_v4 }
 0x175   :  { %3086 = vmatprep.subr.bf16.mxu0 %v4066_v5  ;;  %3140 = vmatpush1.bf16.msra.mxu1 %v4009_v17 }
 0x176   :  { %3142 = vmatprep.subr.bf16.mxu1 %v4013_v18 }
 0x178   :  { %3088 = vmatpush1.bf16.msra.mxu0 %v4069_v13 }
 0x179   :  { %3090 = vmatprep.subr.bf16.mxu0 %v4072_v14  ;;  %3144 = vmatpush1.bf16.msra.mxu1 %v4016_v23 }
 0x17a   :  { %3146 = vmatprep.subr.bf16.mxu1 %v4019_v25 }
 0x17c   :  { %3092 = vmatpush1.bf16.msra.mxu0 %v4075_v21 }
 0x17d   :  { %3094 = vmatprep.subr.bf16.mxu0 %v4078_v22  ;;  %3148 = vmatpush1.bf16.msra.mxu1 %v4023_v31 }
 0x17e   :  { %3150 = vmatprep.subr.bf16.mxu1 %v4027_v32 }
 0x180   :  { %3096 = vmatpush1.bf16.msra.mxu0 %v4081_v29 }
 0x181   :  { %3098 = vmatprep.subr.bf16.mxu0 %v4084_v30  ;;  %3152 = vmatpush1.bf16.msra.mxu1 %v4031_v37 }
 0x182   :  { %3154 = vmatprep.subr.bf16.mxu1 %v4034_v38 }
 0x184   :  { %3100 = vmatpush1.bf16.msra.mxu0 %v4087_v39 }
 0x185   :  { %3102 = vmatprep.subr.bf16.mxu0 %v4090_v40  ;;  %3156 = vmatpush1.bf16.msra.mxu1 %v4037_v43 }
 0x186   :  { %3158 = vmatprep.subr.bf16.mxu1 %v4040_v44 }
 0x188   :  { %3104 = vmatpush1.bf16.msra.mxu0 %v4093_v47 }
 0x189   :  { %3106 = vmatprep.subr.bf16.mxu0 %v4096_v48  ;;  %3160 = vmatpush1.bf16.msra.mxu1 %v4043_v49 }
 0x18a   :  { %3162 = vmatprep.subr.bf16.mxu1 %v4046_v50 }
 0x18c   :  { %3108 = vmatpush1.bf16.msra.mxu0 %v4099_v53 }
 0x18d   :  { %3109 = vmatprep.subr.bf16.mxu0 %v3919_v59  ;;  %3164 = vmatpush1.bf16.msra.mxu1 %v4049_v55 }
 0x18e   :  { %3166 = vmatprep.subr.bf16.mxu1 %v4052_v56 }
 0x18f   :  { %817 = vmatmul.mubr.f32.vlgmr.msra.gmra.mrb[4].mxu0 %v609_v10 }
 0x190   :  { %2744 = vmatprep.mubr.msk.f32.mxu0 %vm3920_vm2, %v3918_v0  ;;  %3111 = vmatpush3.bf16.msra.mxu0 %v3110_v16 }
 0x191   :  { %3112 = vmatprep.subr.bf16.mxu0 %v3919_v59 }
 0x194   :  { %3114 = vmatpush3.bf16.msra.mxu0 %v3113_v24 }
 0x195   :  { %3115 = vmatprep.subr.bf16.mxu0 %v3919_v59 }
 0x198   :  { %3117 = vmatpush3.bf16.msra.mxu0 %v3116_v28 }
 0x199   :  { %3118 = vmatprep.subr.bf16.mxu0 %v3919_v59 }
 0x19c   :  { %3120 = vmatpush3.bf16.msra.mxu0 %v3119_v45 }
 0x19d   :  { %3121 = vmatprep.subr.bf16.mxu0 %v3919_v59 }
 0x1a0   :  { %3123 = vmatpush3.bf16.msra.mxu0 %v3122_v52 }
 0x1a1   :  { %3124 = vmatprep.subr.bf16.mxu0 %v3919_v59 }
 0x1a4   :  { %3126 = vmatpush3.bf16.msra.mxu0 %v3125_v58 }
 0x1a5   :  { %3127 = vmatprep.subr.bf16.mxu0 %v3919_v59 }
 0x1a8   :  { %3129 = vmatpush3.bf16.msra.mxu0 %v3128_v41 }
 0x1a9   :  { %3130 = vmatprep.subr.bf16.mxu0 %v3919_v59 }
 0x1ac   :  { %3132 = vmatpush3.bf16.msra.mxu0 %v3131_v7 }
 0x1ad   :  { %3197 = vmatprep.subr.bf16.mxu0 %v3919_v59 }
 0x242   :  { %v747_v10 = vpop.f32.mrb[6].mxu1 }
 0x243   :  { %v749_v11 = vpop.f32.mrb[7].mxu1  ;;  %v827_v20 = vrot.slane %v747_v10, 7 }
 0x244   :  { %v828_v15 = vrot.slane %v749_v11, 7 }
 0x245   :  { %v835_v24 = vadd.f32 %v827_v20, %v4138_v6 }
 0x246   :  { %v836_v16 = vadd.f32 %v828_v15, %v4136_v3 }
 0x247   :  { %v2520_v26 = vmul.f32 -1.442695, %v835_v24  ;;  %v343_v24 = vld [vmem:[#allocation7 + $0x100] sm:$0xff] }
 0x248   :  { %v2521_v19 = vmul.f32 -1.442695, %v836_v16 }
 0x24a   :  { %3705 = vpow2.f32 %v2521_v19 }
 0x24b   :  { %3707 = vpow2.f32 %v2520_v26  ;;  %v344_v26 = vld [vmem:[#allocation7 + $0x108] sm:$0xff] }
 0x254   :  { %v3706_v27 = vpop.eup %3705 }
 0x255   :  { %v848_v28 = vadd.f32 1.0, %v3706_v27  ;;  %v3708_v33 = vpop.eup %3707  ;;  %v3198_v27 = vpack.c.bf16 %v344_v26, %v343_v24 }
 0x256   :  { %v842_v46 = vadd.f32 1.0, %v3708_v33  ;;  %v346_v33 = vld [vmem:[#allocation7 + $0x118] sm:$0xff] }
 0x257   :  { %3709 = vrcp.f32 %v848_v28  ;;  %v345_v28 = vld [vmem:[#allocation7 + $0x110] sm:$0xff] }
 0x258   :  { %3711 = vrcp.f32 %v842_v46  ;;  %v348_v46 = vld [vmem:[#allocation7 + $0x128] sm:$0xff] }
 0x261   :  { %v3710_v45 = vpop.eup %3709 }
 0x262   :  { %v861_v51 = vmul.f32 %v3710_v45, %v859_v36  ;;  %v818_v52 = vpop.f32.mrb[4].mxu0  ;;  %v3712_v42 = vpop.eup %3711  ;;  %v3201_v36 = vpack.c.bf16 %v346_v33, %v345_v28  ;;  %v347_v45 = vld [vmem:[#allocation7 + $0x120] sm:$0xff] }
 0x263   :  { %v829_v54 = vrot.slane %v818_v52, 7  ;;  %v820_v57 = vpop.f32.mrb[5].mxu0  ;;  %v349_v52 = vld [vmem:[#allocation7 + $0x130] sm:$0xff] }
 0x264   :  { %v830_v58 = vrot.slane %v820_v57, 7 }
 0x265   :  { %v837_v60 = vadd.f32 %v829_v54, %v4142_v34  ;;  %v350_v54 = vld [vmem:[#allocation7 + $0x138] sm:$0xff] }
 0x266   :  { %v838_v63 = vadd.f32 %v830_v58, %v4144_v35  ;;  %v3207_v57 = vpack.c.bf16 %v350_v54, %v349_v52  ;;  %v351_v58 = vld [vmem:[#allocation7 + $0x140] sm:$0xff] }
 0x267   :  { %3713 = vtanh.f32 %v837_v60  ;;  %v352_v60 = vld [vmem:[#allocation7 + $0x148] sm:$0xff] }
 0x268   :  { %v2522_v41 = vmul.f32 -1.442695, %v838_v63  ;;  %v3210_v63 = vpack.c.bf16 %v352_v60, %v351_v58 }
 0x26a   :  { %3715 = vpow2.f32 %v2522_v41  ;;  %v353_v41 = vld [vmem:[#allocation7 + $0x150] sm:$0xff] }
 0x271   :  { %v3714_v2 = vpop.eup %3713 }
 0x272   :  { %v862_v7 = vmul.f32 %v3714_v2, %v3712_v42  ;;  %v354_v42 = vld [vmem:[#allocation7 + $0x158] sm:$0xff]  ;;  %v355_v2 = vld [vmem:[#allocation7 + $0x160] sm:$0xff] }
 0x274   :  { %v3716_v10 = vpop.eup %3715  ;;  %v4200_v1 = vadd.f32 %v862_v7, %v861_v51  ;;  %v3204_v51 = vpack.c.bf16 %v348_v46, %v347_v45  ;;  %v3213_v7 = vpack.c.bf16 %v354_v42, %v353_v41 }
 0x275   :  { %v855_v11 = vadd.f32 1.0, %v3716_v10  ;;  %v356_v10 = vld [vmem:[#allocation7 + $0x168] sm:$0xff] }
 0x276   :  { %3717 = vtanh.f32 %v4200_v1  ;;  %v1118_v54 = vrot.slane %v4200_v1, 7 }
 0x277   :  { %3719 = vrcp.f32 %v855_v11  ;;  %v3216_v11 = vpack.c.bf16 %v356_v10, %v355_v2 }
 0x280   :  { %v3718_v15 = vpop.eup %3717 }
 0x281   :  { %v3720_v16 = vpop.eup %3719 }
 0x282   :  { %v865_v19 = vmul.f32 %v3720_v16, %v3718_v15  ;;  %v357_v15 = vld [vmem:[#allocation7 + $0x170] sm:$0xff]  ;;  %v358_v16 = vld [vmem:[#allocation7 + $0x178] sm:$0xff] }
 0x284   :  { %v867_v20 = vrot.slane %v865_v19, 1  ;;  %v3219_v19 = vpack.c.bf16 %v358_v16, %v357_v15 }
 0x286   :  { %2745 = vmatmul.mubr.f32.vlgmr.msra.gmra.mrb[2].mxu0 %v867_v20  ;;  %1005 = vmatmul.mubr.f32.vlgmr.msra.gmra.mrb[8].mxu1 %v867_v20 }
 0x287   :  { %3168 = vmatpush1.bf16.msra.mxu1 %v4055_v61  ;;  %1075 = vmatprep.mubr.f32.mxu1 %v3918_v0 }
 0x288   :  { %3170 = vmatprep.subr.bf16.mxu1 %v4058_v62  ;;  %2779 = vmatprep.mubr.msk.f32.mxu0 %vm3920_vm2, %v3918_v0 }
 0x289   :  { %3199 = vmatpush3.bf16.msra.mxu0 %v3198_v27 }
 0x28a   :  { %3200 = vmatprep.subr.bf16.mxu0 %v3919_v59 }
 0x28b   :  { %3172 = vmatpush1.bf16.msra.mxu1 %v4062_v4 }
 0x28c   :  { %3174 = vmatprep.subr.bf16.mxu1 %v4066_v5 }
 0x28d   :  { %3202 = vmatpush3.bf16.msra.mxu0 %v3201_v36 }
 0x28e   :  { %3203 = vmatprep.subr.bf16.mxu0 %v3919_v59 }
 0x28f   :  { %3176 = vmatpush1.bf16.msra.mxu1 %v4069_v13 }
 0x290   :  { %3178 = vmatprep.subr.bf16.mxu1 %v4072_v14 }
 0x291   :  { %3205 = vmatpush3.bf16.msra.mxu0 %v3204_v51 }
 0x292   :  { %3206 = vmatprep.subr.bf16.mxu0 %v3919_v59 }
 0x293   :  { %3180 = vmatpush1.bf16.msra.mxu1 %v4075_v21 }
 0x294   :  { %3182 = vmatprep.subr.bf16.mxu1 %v4078_v22 }
 0x295   :  { %3208 = vmatpush3.bf16.msra.mxu0 %v3207_v57 }
 0x296   :  { %3209 = vmatprep.subr.bf16.mxu0 %v3919_v59 }
 0x297   :  { %3184 = vmatpush1.bf16.msra.mxu1 %v4081_v29 }
 0x298   :  { %3186 = vmatprep.subr.bf16.mxu1 %v4084_v30 }
 0x299   :  { %3211 = vmatpush3.bf16.msra.mxu0 %v3210_v63 }
 0x29a   :  { %3212 = vmatprep.subr.bf16.mxu0 %v3919_v59 }
 0x29b   :  { %3188 = vmatpush1.bf16.msra.mxu1 %v4087_v39 }
 0x29c   :  { %3190 = vmatprep.subr.bf16.mxu1 %v4090_v40 }
 0x29d   :  { %3214 = vmatpush3.bf16.msra.mxu0 %v3213_v7 }
 0x29e   :  { %3215 = vmatprep.subr.bf16.mxu0 %v3919_v59 }
 0x29f   :  { %3192 = vmatpush1.bf16.msra.mxu1 %v4093_v47 }
 0x2a0   :  { %3194 = vmatprep.subr.bf16.mxu1 %v4096_v48 }
 0x2a1   :  { %3217 = vmatpush3.bf16.msra.mxu0 %v3216_v11 }
 0x2a2   :  { %3218 = vmatprep.subr.bf16.mxu0 %v3919_v59 }
 0x2a3   :  { %3196 = vmatpush1.bf16.msra.mxu1 %v4099_v53 }
 0x2a4   :  { %3222 = vmatprep.subr.bf16.mxu1 %v3998_v8 }
 0x2a5   :  { %3220 = vmatpush3.bf16.msra.mxu0 %v3219_v19 }
 0x2a6   :  { %1076 = vmatmul.mubr.f32.vlgmr.msra.gmra.mrb[10].mxu1 %v867_v20  ;;  %3254 = vmatprep.subr.bf16.mxu0 %v4052_v56 }
 0x2a7   :  { %3224 = vmatpush1.bf16.msra.mxu1 %v4000_v9  ;;  %1263 = vmatprep.mubr.f32.mxu1 %v3918_v0 }
 0x2a8   :  { %3226 = vmatprep.subr.bf16.mxu1 %v4003_v12 }
 0x2ab   :  { %3228 = vmatpush1.bf16.msra.mxu1 %v4009_v17 }
 0x2ac   :  { %3230 = vmatprep.subr.bf16.mxu1 %v4013_v18 }
 0x2af   :  { %3232 = vmatpush1.bf16.msra.mxu1 %v4016_v23 }
 0x2b0   :  { %3234 = vmatprep.subr.bf16.mxu1 %v4019_v25 }
 0x2b3   :  { %3236 = vmatpush1.bf16.msra.mxu1 %v4023_v31 }
 0x2b4   :  { %3238 = vmatprep.subr.bf16.mxu1 %v4027_v32 }
 0x2b7   :  { %3240 = vmatpush1.bf16.msra.mxu1 %v4031_v37 }
 0x2b8   :  { %3242 = vmatprep.subr.bf16.mxu1 %v4034_v38 }
 0x2bb   :  { %3244 = vmatpush1.bf16.msra.mxu1 %v4037_v43 }
 0x2bc   :  { %3246 = vmatprep.subr.bf16.mxu1 %v4040_v44 }
 0x2bf   :  { %3248 = vmatpush1.bf16.msra.mxu1 %v4043_v49 }
 0x2c0   :  { %3250 = vmatprep.subr.bf16.mxu1 %v4046_v50 }
 0x2c3   :  { %3252 = vmatpush1.bf16.msra.mxu1 %v4049_v55 }
 0x2c4   :  { %3310 = vmatprep.subr.bf16.mxu1 %v3998_v8 }
 0x359   :  { %v1006_v20 = vpop.f32.mrb[8].mxu1 }
 0x35a   :  { %v1008_v24 = vpop.f32.mrb[9].mxu1  ;;  %v1086_v33 = vrot.slane %v1006_v20, 6 }
 0x35b   :  { %v1087_v26 = vrot.slane %v1008_v24, 6 }
 0x35c   :  { %v1094_v36 = vadd.f32 %v1086_v33, %v4138_v6 }
 0x35d   :  { %v1095_v27 = vadd.f32 %v1087_v26, %v4136_v3 }
 0x35e   :  { %v2523_v45 = vmul.f32 -1.442695, %v1094_v36  ;;  %v359_v36 = vld [vmem:[#allocation7 + $0x180] sm:$0xff] }
 0x35f   :  { %v2524_v28 = vmul.f32 -1.442695, %v1095_v27 }
 0x361   :  { %3721 = vpow2.f32 %v2524_v28 }
 0x362   :  { %3723 = vpow2.f32 %v2523_v45  ;;  %v360_v45 = vld [vmem:[#allocation7 + $0x188] sm:$0xff] }
 0x36b   :  { %v3722_v46 = vpop.eup %3721 }
 0x36c   :  { %v1107_v51 = vadd.f32 1.0, %v3722_v46  ;;  %v3724_v52 = vpop.eup %3723  ;;  %v3286_v46 = vpack.c.bf16 %v360_v45, %v359_v36 }
 0x36d   :  { %v1101_v58 = vadd.f32 1.0, %v3724_v52  ;;  %v362_v52 = vld [vmem:[#allocation7 + $0x198] sm:$0xff] }
 0x36e   :  { %3725 = vrcp.f32 %v1107_v51  ;;  %v361_v51 = vld [vmem:[#allocation7 + $0x190] sm:$0xff] }
 0x36f   :  { %3727 = vrcp.f32 %v1101_v58  ;;  %v364_v58 = vld [vmem:[#allocation7 + $0x1a8] sm:$0xff] }
 0x378   :  { %v3726_v57 = vpop.eup %3725 }
 0x379   :  { %v1120_v60 = vmul.f32 %v3726_v57, %v1118_v54  ;;  %v1077_v63 = vpop.f32.mrb[10].mxu1  ;;  %v3728_v15 = vpop.eup %3727  ;;  %v3289_v54 = vpack.c.bf16 %v362_v52, %v361_v51  ;;  %v363_v57 = vld [vmem:[#allocation7 + $0x1a0] sm:$0xff] }
 0x37a   :  { %v1088_v41 = vrot.slane %v1077_v63, 6  ;;  %v1079_v42 = vpop.f32.mrb[11].mxu1  ;;  %v365_v63 = vld [vmem:[#allocation7 + $0x1b0] sm:$0xff] }
 0x37b   :  { %v1089_v2 = vrot.slane %v1079_v42, 6 }
 0x37c   :  { %v1096_v7 = vadd.f32 %v1088_v41, %v4142_v34  ;;  %v366_v41 = vld [vmem:[#allocation7 + $0x1b8] sm:$0xff] }
 0x37d   :  { %v1097_v10 = vadd.f32 %v1089_v2, %v4144_v35  ;;  %v3295_v42 = vpack.c.bf16 %v366_v41, %v365_v63  ;;  %v367_v2 = vld [vmem:[#allocation7 + $0x1c0] sm:$0xff] }
 0x37e   :  { %3729 = vtanh.f32 %v1096_v7  ;;  %v368_v7 = vld [vmem:[#allocation7 + $0x1c8] sm:$0xff] }
 0x37f   :  { %v2525_v11 = vmul.f32 -1.442695, %v1097_v10  ;;  %v3298_v10 = vpack.c.bf16 %v368_v7, %v367_v2 }
 0x381   :  { %3731 = vpow2.f32 %v2525_v11  ;;  %v369_v11 = vld [vmem:[#allocation7 + $0x1d0] sm:$0xff] }
 0x388   :  { %v3730_v16 = vpop.eup %3729 }
 0x389   :  { %v1121_v19 = vmul.f32 %v3730_v16, %v3728_v15  ;;  %v370_v15 = vld [vmem:[#allocation7 + $0x1d8] sm:$0xff] }
 0x38a   :  { %v3301_v16 = vpack.c.bf16 %v370_v15, %v369_v11 }
 0x38b   :  { %v3732_v20 = vpop.eup %3731  ;;  %v4252_v1 = vadd.f32 %v1121_v19, %v1120_v60  ;;  %v3292_v60 = vpack.c.bf16 %v364_v58, %v363_v57  ;;  %v371_v19 = vld [vmem:[#allocation7 + $0x1e0] sm:$0xff] }
 0x38c   :  { %v1114_v24 = vadd.f32 1.0, %v3732_v20  ;;  %v372_v20 = vld [vmem:[#allocation7 + $0x1e8] sm:$0xff] }
 0x38d   :  { %3733 = vtanh.f32 %v4252_v1  ;;  %v1377_v41 = vrot.slane %v4252_v1, 7 }
 0x38e   :  { %3735 = vrcp.f32 %v1114_v24  ;;  %v3304_v24 = vpack.c.bf16 %v372_v20, %v371_v19 }
 0x397   :  { %v3734_v26 = vpop.eup %3733 }
 0x398   :  { %v3736_v27 = vpop.eup %3735 }
 0x399   :  { %v1124_v28 = vmul.f32 %v3736_v27, %v3734_v26  ;;  %v373_v26 = vld [vmem:[#allocation7 + $0x1f0] sm:$0xff]  ;;  %v374_v27 = vld [vmem:[#allocation7 + $0x1f8] sm:$0xff] }
 0x39b   :  { %v1126_v33 = vrot.slane %v1124_v28, 2  ;;  %v3307_v28 = vpack.c.bf16 %v374_v27, %v373_v26 }
 0x39d   :  { %2780 = vmatmul.mubr.f32.vlgmr.msra.gmra.mrb[2].mxu0 %v1126_v33  ;;  %1264 = vmatmul.mubr.f32.vlgmr.msra.gmra.mrb[12].mxu1 %v1126_v33 }
 0x39e   :  { %3256 = vmatpush1.bf16.msra.mxu0 %v4055_v61  ;;  %1334 = vmatprep.mubr.f32.mxu0 %v3918_v0 }
 0x39f   :  { %3258 = vmatprep.subr.bf16.mxu0 %v4058_v62  ;;  %3312 = vmatpush1.bf16.msra.mxu1 %v4000_v9 }
 0x3a0   :  { %3314 = vmatprep.subr.bf16.mxu1 %v4003_v12  ;;  %1522 = vmatprep.mubr.f32.mxu1 %v3918_v0 }
 0x3a2   :  { %3260 = vmatpush1.bf16.msra.mxu0 %v4062_v4 }
 0x3a3   :  { %3262 = vmatprep.subr.bf16.mxu0 %v4066_v5  ;;  %3316 = vmatpush1.bf16.msra.mxu1 %v4009_v17 }
 0x3a4   :  { %3318 = vmatprep.subr.bf16.mxu1 %v4013_v18 }
 0x3a6   :  { %3264 = vmatpush1.bf16.msra.mxu0 %v4069_v13 }
 0x3a7   :  { %3266 = vmatprep.subr.bf16.mxu0 %v4072_v14  ;;  %3320 = vmatpush1.bf16.msra.mxu1 %v4016_v23 }
 0x3a8   :  { %3322 = vmatprep.subr.bf16.mxu1 %v4019_v25 }
 0x3aa   :  { %3268 = vmatpush1.bf16.msra.mxu0 %v4075_v21 }
 0x3ab   :  { %3270 = vmatprep.subr.bf16.mxu0 %v4078_v22  ;;  %3324 = vmatpush1.bf16.msra.mxu1 %v4023_v31 }
 0x3ac   :  { %3326 = vmatprep.subr.bf16.mxu1 %v4027_v32 }
 0x3ae   :  { %3272 = vmatpush1.bf16.msra.mxu0 %v4081_v29 }
 0x3af   :  { %3274 = vmatprep.subr.bf16.mxu0 %v4084_v30  ;;  %3328 = vmatpush1.bf16.msra.mxu1 %v4031_v37 }
 0x3b0   :  { %3330 = vmatprep.subr.bf16.mxu1 %v4034_v38 }
 0x3b2   :  { %3276 = vmatpush1.bf16.msra.mxu0 %v4087_v39 }
 0x3b3   :  { %3278 = vmatprep.subr.bf16.mxu0 %v4090_v40  ;;  %3332 = vmatpush1.bf16.msra.mxu1 %v4037_v43 }
 0x3b4   :  { %3334 = vmatprep.subr.bf16.mxu1 %v4040_v44 }
 0x3b6   :  { %3280 = vmatpush1.bf16.msra.mxu0 %v4093_v47 }
 0x3b7   :  { %3282 = vmatprep.subr.bf16.mxu0 %v4096_v48  ;;  %3336 = vmatpush1.bf16.msra.mxu1 %v4043_v49 }
 0x3b8   :  { %3338 = vmatprep.subr.bf16.mxu1 %v4046_v50 }
 0x3ba   :  { %3284 = vmatpush1.bf16.msra.mxu0 %v4099_v53 }
 0x3bb   :  { %3285 = vmatprep.subr.bf16.mxu0 %v3919_v59  ;;  %3340 = vmatpush1.bf16.msra.mxu1 %v4049_v55 }
 0x3bc   :  { %3342 = vmatprep.subr.bf16.mxu1 %v4052_v56 }
 0x3bd   :  { %1335 = vmatmul.mubr.f32.vlgmr.msra.gmra.mrb[6].mxu0 %v1126_v33 }
 0x3be   :  { %2814 = vmatprep.mubr.msk.f32.mxu0 %vm3920_vm2, %v3918_v0  ;;  %3287 = vmatpush3.bf16.msra.mxu0 %v3286_v46 }
 0x3bf   :  { %3288 = vmatprep.subr.bf16.mxu0 %v3919_v59 }
 0x3c2   :  { %3290 = vmatpush3.bf16.msra.mxu0 %v3289_v54 }
 0x3c3   :  { %3291 = vmatprep.subr.bf16.mxu0 %v3919_v59 }
 0x3c6   :  { %3293 = vmatpush3.bf16.msra.mxu0 %v3292_v60 }
 0x3c7   :  { %3294 = vmatprep.subr.bf16.mxu0 %v3919_v59 }
 0x3ca   :  { %3296 = vmatpush3.bf16.msra.mxu0 %v3295_v42 }
 0x3cb   :  { %3297 = vmatprep.subr.bf16.mxu0 %v3919_v59 }
 0x3ce   :  { %3299 = vmatpush3.bf16.msra.mxu0 %v3298_v10 }
 0x3cf   :  { %3300 = vmatprep.subr.bf16.mxu0 %v3919_v59 }
 0x3d2   :  { %3302 = vmatpush3.bf16.msra.mxu0 %v3301_v16 }
 0x3d3   :  { %3303 = vmatprep.subr.bf16.mxu0 %v3919_v59 }
 0x3d6   :  { %3305 = vmatpush3.bf16.msra.mxu0 %v3304_v24 }
 0x3d7   :  { %3306 = vmatprep.subr.bf16.mxu0 %v3919_v59 }
 0x3da   :  { %3308 = vmatpush3.bf16.msra.mxu0 %v3307_v28 }
 0x3db   :  { %3373 = vmatprep.subr.bf16.mxu0 %v3919_v59 }
 0x470   :  { %v1265_v33 = vpop.f32.mrb[12].mxu1 }
 0x471   :  { %v1267_v36 = vpop.f32.mrb[13].mxu1  ;;  %v1345_v52 = vrot.slane %v1265_v33, 5 }
 0x472   :  { %v1346_v45 = vrot.slane %v1267_v36, 5 }
 0x473   :  { %v1353_v54 = vadd.f32 %v1345_v52, %v4138_v6 }
 0x474   :  { %v1354_v46 = vadd.f32 %v1346_v45, %v4136_v3 }
 0x475   :  { %v2526_v57 = vmul.f32 -1.442695, %v1353_v54  ;;  %v375_v54 = vld [vmem:[#allocation7 + $0x200] sm:$0xff] }
 0x476   :  { %v2527_v51 = vmul.f32 -1.442695, %v1354_v46 }
 0x478   :  { %3737 = vpow2.f32 %v2527_v51 }
 0x479   :  { %3739 = vpow2.f32 %v2526_v57  ;;  %v376_v57 = vld [vmem:[#allocation7 + $0x208] sm:$0xff] }
 0x482   :  { %v3738_v58 = vpop.eup %3737 }
 0x483   :  { %v1366_v60 = vadd.f32 1.0, %v3738_v58  ;;  %v3740_v63 = vpop.eup %3739  ;;  %v3374_v58 = vpack.c.bf16 %v376_v57, %v375_v54 }
 0x484   :  { %v1360_v2 = vadd.f32 1.0, %v3740_v63  ;;  %v378_v63 = vld [vmem:[#allocation7 + $0x218] sm:$0xff] }
 0x485   :  { %3741 = vrcp.f32 %v1366_v60  ;;  %v377_v60 = vld [vmem:[#allocation7 + $0x210] sm:$0xff] }
 0x486   :  { %3743 = vrcp.f32 %v1360_v2  ;;  %v380_v2 = vld [vmem:[#allocation7 + $0x228] sm:$0xff] }
 0x48f   :  { %v3742_v42 = vpop.eup %3741 }
 0x490   :  { %v1379_v7 = vmul.f32 %v3742_v42, %v1377_v41  ;;  %v1336_v10 = vpop.f32.mrb[6].mxu0  ;;  %v3744_v26 = vpop.eup %3743  ;;  %v3377_v41 = vpack.c.bf16 %v378_v63, %v377_v60  ;;  %v379_v42 = vld [vmem:[#allocation7 + $0x220] sm:$0xff] }
 0x491   :  { %v1347_v11 = vrot.slane %v1336_v10, 5  ;;  %v1338_v15 = vpop.f32.mrb[7].mxu0  ;;  %v381_v10 = vld [vmem:[#allocation7 + $0x230] sm:$0xff] }
 0x492   :  { %v1348_v16 = vrot.slane %v1338_v15, 5 }
 0x493   :  { %v1355_v19 = vadd.f32 %v1347_v11, %v4142_v34  ;;  %v382_v11 = vld [vmem:[#allocation7 + $0x238] sm:$0xff] }
 0x494   :  { %v1356_v20 = vadd.f32 %v1348_v16, %v4144_v35  ;;  %v3383_v15 = vpack.c.bf16 %v382_v11, %v381_v10  ;;  %v383_v16 = vld [vmem:[#allocation7 + $0x240] sm:$0xff] }
 0x495   :  { %3745 = vtanh.f32 %v1355_v19  ;;  %v384_v19 = vld [vmem:[#allocation7 + $0x248] sm:$0xff] }
 0x496   :  { %v2528_v24 = vmul.f32 -1.442695, %v1356_v20  ;;  %v3386_v20 = vpack.c.bf16 %v384_v19, %v383_v16 }
 0x498   :  { %3747 = vpow2.f32 %v2528_v24  ;;  %v385_v24 = vld [vmem:[#allocation7 + $0x250] sm:$0xff] }
 0x49f   :  { %v3746_v27 = vpop.eup %3745 }
 0x4a0   :  { %v1380_v28 = vmul.f32 %v3746_v27, %v3744_v26  ;;  %v386_v26 = vld [vmem:[#allocation7 + $0x258] sm:$0xff]  ;;  %v387_v27 = vld [vmem:[#allocation7 + $0x260] sm:$0xff] }
 0x4a2   :  { %v3748_v33 = vpop.eup %3747  ;;  %v4304_v1 = vadd.f32 %v1380_v28, %v1379_v7  ;;  %v3380_v7 = vpack.c.bf16 %v380_v2, %v379_v42  ;;  %v3389_v28 = vpack.c.bf16 %v386_v26, %v385_v24 }
 0x4a3   :  { %v1373_v36 = vadd.f32 1.0, %v3748_v33  ;;  %v388_v33 = vld [vmem:[#allocation7 + $0x268] sm:$0xff] }
 0x4a4   :  { %3749 = vtanh.f32 %v4304_v1  ;;  %v1636_v11 = vrot.slane %v4304_v1, 7 }
 0x4a5   :  { %3751 = vrcp.f32 %v1373_v36  ;;  %v3392_v36 = vpack.c.bf16 %v388_v33, %v387_v27 }
 0x4ae   :  { %v3750_v45 = vpop.eup %3749 }
 0x4af   :  { %v3752_v46 = vpop.eup %3751 }
 0x4b0   :  { %v1383_v51 = vmul.f32 %v3752_v46, %v3750_v45  ;;  %v389_v45 = vld [vmem:[#allocation7 + $0x270] sm:$0xff]  ;;  %v390_v46 = vld [vmem:[#allocation7 + $0x278] sm:$0xff] }
 0x4b2   :  { %v1385_v52 = vrot.slane %v1383_v51, 3  ;;  %v3395_v51 = vpack.c.bf16 %v390_v46, %v389_v45 }
 0x4b4   :  { %2815 = vmatmul.mubr.f32.vlgmr.msra.gmra.mrb[2].mxu0 %v1385_v52  ;;  %1523 = vmatmul.mubr.f32.vlgmr.msra.gmra.mrb[14].mxu1 %v1385_v52 }
 0x4b5   :  { %3344 = vmatpush1.bf16.msra.mxu1 %v4055_v61  ;;  %1593 = vmatprep.mubr.f32.mxu1 %v3918_v0 }
 0x4b6   :  { %3346 = vmatprep.subr.bf16.mxu1 %v4058_v62  ;;  %2849 = vmatprep.mubr.msk.f32.mxu0 %vm3920_vm2, %v3918_v0 }
 0x4b7   :  { %3375 = vmatpush3.bf16.msra.mxu0 %v3374_v58 }
 0x4b8   :  { %3376 = vmatprep.subr.bf16.mxu0 %v3919_v59 }
 0x4b9   :  { %3348 = vmatpush1.bf16.msra.mxu1 %v4062_v4 }
 0x4ba   :  { %3350 = vmatprep.subr.bf16.mxu1 %v4066_v5 }
 0x4bb   :  { %3378 = vmatpush3.bf16.msra.mxu0 %v3377_v41 }
 0x4bc   :  { %3379 = vmatprep.subr.bf16.mxu0 %v3919_v59 }
 0x4bd   :  { %3352 = vmatpush1.bf16.msra.mxu1 %v4069_v13 }
 0x4be   :  { %3354 = vmatprep.subr.bf16.mxu1 %v4072_v14 }
 0x4bf   :  { %3381 = vmatpush3.bf16.msra.mxu0 %v3380_v7 }
 0x4c0   :  { %3382 = vmatprep.subr.bf16.mxu0 %v3919_v59 }
 0x4c1   :  { %3356 = vmatpush1.bf16.msra.mxu1 %v4075_v21 }
 0x4c2   :  { %3358 = vmatprep.subr.bf16.mxu1 %v4078_v22 }
 0x4c3   :  { %3384 = vmatpush3.bf16.msra.mxu0 %v3383_v15 }
 0x4c4   :  { %3385 = vmatprep.subr.bf16.mxu0 %v3919_v59 }
 0x4c5   :  { %3360 = vmatpush1.bf16.msra.mxu1 %v4081_v29 }
 0x4c6   :  { %3362 = vmatprep.subr.bf16.mxu1 %v4084_v30 }
 0x4c7   :  { %3387 = vmatpush3.bf16.msra.mxu0 %v3386_v20 }
 0x4c8   :  { %3388 = vmatprep.subr.bf16.mxu0 %v3919_v59 }
 0x4c9   :  { %3364 = vmatpush1.bf16.msra.mxu1 %v4087_v39 }
 0x4ca   :  { %3366 = vmatprep.subr.bf16.mxu1 %v4090_v40 }
 0x4cb   :  { %3390 = vmatpush3.bf16.msra.mxu0 %v3389_v28 }
 0x4cc   :  { %3391 = vmatprep.subr.bf16.mxu0 %v3919_v59 }
 0x4cd   :  { %3368 = vmatpush1.bf16.msra.mxu1 %v4093_v47 }
 0x4ce   :  { %3370 = vmatprep.subr.bf16.mxu1 %v4096_v48 }
 0x4cf   :  { %3393 = vmatpush3.bf16.msra.mxu0 %v3392_v36 }
 0x4d0   :  { %3394 = vmatprep.subr.bf16.mxu0 %v3919_v59 }
 0x4d1   :  { %3372 = vmatpush1.bf16.msra.mxu1 %v4099_v53 }
 0x4d2   :  { %3398 = vmatprep.subr.bf16.mxu1 %v3998_v8 }
 0x4d3   :  { %3396 = vmatpush3.bf16.msra.mxu0 %v3395_v51 }
 0x4d4   :  { %1594 = vmatmul.mubr.f32.vlgmr.msra.gmra.mrb[16].mxu1 %v1385_v52  ;;  %3430 = vmatprep.subr.bf16.mxu0 %v4052_v56 }
 0x4d5   :  { %3400 = vmatpush1.bf16.msra.mxu1 %v4000_v9  ;;  %1781 = vmatprep.mubr.f32.mxu1 %v3918_v0 }
 0x4d6   :  { %3402 = vmatprep.subr.bf16.mxu1 %v4003_v12 }
 0x4d9   :  { %3404 = vmatpush1.bf16.msra.mxu1 %v4009_v17 }
 0x4da   :  { %3406 = vmatprep.subr.bf16.mxu1 %v4013_v18 }
 0x4dd   :  { %3408 = vmatpush1.bf16.msra.mxu1 %v4016_v23 }
 0x4de   :  { %3410 = vmatprep.subr.bf16.mxu1 %v4019_v25 }
 0x4e1   :  { %3412 = vmatpush1.bf16.msra.mxu1 %v4023_v31 }
 0x4e2   :  { %3414 = vmatprep.subr.bf16.mxu1 %v4027_v32 }
 0x4e5   :  { %3416 = vmatpush1.bf16.msra.mxu1 %v4031_v37 }
 0x4e6   :  { %3418 = vmatprep.subr.bf16.mxu1 %v4034_v38 }
 0x4e9   :  { %3420 = vmatpush1.bf16.msra.mxu1 %v4037_v43 }
 0x4ea   :  { %3422 = vmatprep.subr.bf16.mxu1 %v4040_v44 }
 0x4ed   :  { %3424 = vmatpush1.bf16.msra.mxu1 %v4043_v49 }
 0x4ee   :  { %3426 = vmatprep.subr.bf16.mxu1 %v4046_v50 }
 0x4f1   :  { %3428 = vmatpush1.bf16.msra.mxu1 %v4049_v55 }
 0x4f2   :  { %3486 = vmatprep.subr.bf16.mxu1 %v3998_v8 }
 0x587   :  { %v1524_v52 = vpop.f32.mrb[14].mxu1 }
 0x588   :  { %v1526_v54 = vpop.f32.mrb[15].mxu1  ;;  %v1604_v63 = vrot.slane %v1524_v52, 4 }
 0x589   :  { %v1605_v57 = vrot.slane %v1526_v54, 4 }
 0x58a   :  { %v1612_v41 = vadd.f32 %v1604_v63, %v4138_v6 }
 0x58b   :  { %v1613_v58 = vadd.f32 %v1605_v57, %v4136_v3 }
 0x58c   :  { %v2529_v42 = vmul.f32 -1.442695, %v1612_v41  ;;  %v391_v41 = vld [vmem:[#allocation7 + $0x280] sm:$0xff] }
 0x58d   :  { %v2530_v60 = vmul.f32 -1.442695, %v1613_v58 }
 0x58f   :  { %3753 = vpow2.f32 %v2530_v60 }
 0x590   :  { %3755 = vpow2.f32 %v2529_v42  ;;  %v392_v42 = vld [vmem:[#allocation7 + $0x288] sm:$0xff] }
 0x599   :  { %v3754_v2 = vpop.eup %3753 }
 0x59a   :  { %v1625_v7 = vadd.f32 1.0, %v3754_v2  ;;  %v3756_v10 = vpop.eup %3755  ;;  %v3462_v2 = vpack.c.bf16 %v392_v42, %v391_v41 }
 0x59b   :  { %v1619_v16 = vadd.f32 1.0, %v3756_v10  ;;  %v394_v10 = vld [vmem:[#allocation7 + $0x298] sm:$0xff] }
 0x59c   :  { %3757 = vrcp.f32 %v1625_v7  ;;  %v393_v7 = vld [vmem:[#allocation7 + $0x290] sm:$0xff] }
 0x59d   :  { %3759 = vrcp.f32 %v1619_v16  ;;  %v396_v16 = vld [vmem:[#allocation7 + $0x2a8] sm:$0xff] }
 0x5a6   :  { %v3758_v15 = vpop.eup %3757 }
 0x5a7   :  { %v1638_v19 = vmul.f32 %v3758_v15, %v1636_v11  ;;  %v1595_v20 = vpop.f32.mrb[16].mxu1  ;;  %v3760_v45 = vpop.eup %3759  ;;  %v3465_v11 = vpack.c.bf16 %v394_v10, %v393_v7  ;;  %v395_v15 = vld [vmem:[#allocation7 + $0x2a0] sm:$0xff] }
 0x5a8   :  { %v1606_v24 = vrot.slane %v1595_v20, 4  ;;  %v1597_v26 = vpop.f32.mrb[17].mxu1  ;;  %v397_v20 = vld [vmem:[#allocation7 + $0x2b0] sm:$0xff] }
 0x5a9   :  { %v1607_v27 = vrot.slane %v1597_v26, 4 }
 0x5aa   :  { %v1614_v28 = vadd.f32 %v1606_v24, %v4142_v34  ;;  %v398_v24 = vld [vmem:[#allocation7 + $0x2b8] sm:$0xff] }
 0x5ab   :  { %v1615_v33 = vadd.f32 %v1607_v27, %v4144_v35  ;;  %v3471_v26 = vpack.c.bf16 %v398_v24, %v397_v20  ;;  %v399_v27 = vld [vmem:[#allocation7 + $0x2c0] sm:$0xff] }
 0x5ac   :  { %3761 = vtanh.f32 %v1614_v28  ;;  %v400_v28 = vld [vmem:[#allocation7 + $0x2c8] sm:$0xff] }
 0x5ad   :  { %v2531_v36 = vmul.f32 -1.442695, %v1615_v33  ;;  %v3474_v33 = vpack.c.bf16 %v400_v28, %v399_v27 }
 0x5af   :  { %3763 = vpow2.f32 %v2531_v36  ;;  %v401_v36 = vld [vmem:[#allocation7 + $0x2d0] sm:$0xff] }
 0x5b6   :  { %v3762_v46 = vpop.eup %3761 }
 0x5b7   :  { %v1639_v51 = vmul.f32 %v3762_v46, %v3760_v45  ;;  %v402_v45 = vld [vmem:[#allocation7 + $0x2d8] sm:$0xff] }
 0x5b8   :  { %v3477_v46 = vpack.c.bf16 %v402_v45, %v401_v36 }
 0x5b9   :  { %v3764_v52 = vpop.eup %3763  ;;  %v4356_v1 = vadd.f32 %v1639_v51, %v1638_v19  ;;  %v3468_v19 = vpack.c.bf16 %v396_v16, %v395_v15  ;;  %v403_v51 = vld [vmem:[#allocation7 + $0x2e0] sm:$0xff] }
 0x5ba   :  { %v1632_v54 = vadd.f32 1.0, %v3764_v52  ;;  %v404_v52 = vld [vmem:[#allocation7 + $0x2e8] sm:$0xff] }
 0x5bb   :  { %3765 = vtanh.f32 %v4356_v1  ;;  %v1895_v24 = vrot.slane %v4356_v1, 7 }
 0x5bc   :  { %3767 = vrcp.f32 %v1632_v54  ;;  %v3480_v54 = vpack.c.bf16 %v404_v52, %v403_v51 }
 0x5c5   :  { %v3766_v57 = vpop.eup %3765 }
 0x5c6   :  { %v3768_v58 = vpop.eup %3767 }
 0x5c7   :  { %v1642_v60 = vmul.f32 %v3768_v58, %v3766_v57  ;;  %v405_v57 = vld [vmem:[#allocation7 + $0x2f0] sm:$0xff]  ;;  %v406_v58 = vld [vmem:[#allocation7 + $0x2f8] sm:$0xff] }
 0x5c9   :  { %v1644_v63 = vrot.slane %v1642_v60, 4  ;;  %v3483_v60 = vpack.c.bf16 %v406_v58, %v405_v57 }
 0x5cb   :  { %2850 = vmatmul.mubr.f32.vlgmr.msra.gmra.mrb[2].mxu0 %v1644_v63  ;;  %1782 = vmatmul.mubr.f32.vlgmr.msra.gmra.mrb[18].mxu1 %v1644_v63 }
 0x5cc   :  { %3432 = vmatpush1.bf16.msra.mxu0 %v4055_v61  ;;  %1852 = vmatprep.mubr.f32.mxu0 %v3918_v0 }
 0x5cd   :  { %3434 = vmatprep.subr.bf16.mxu0 %v4058_v62  ;;  %3488 = vmatpush1.bf16.msra.mxu1 %v4000_v9 }
 0x5ce   :  { %3490 = vmatprep.subr.bf16.mxu1 %v4003_v12  ;;  %2040 = vmatprep.mubr.f32.mxu1 %v3918_v0 }
 0x5d0   :  { %3436 = vmatpush1.bf16.msra.mxu0 %v4062_v4 }
 0x5d1   :  { %3438 = vmatprep.subr.bf16.mxu0 %v4066_v5  ;;  %3492 = vmatpush1.bf16.msra.mxu1 %v4009_v17 }
 0x5d2   :  { %3494 = vmatprep.subr.bf16.mxu1 %v4013_v18 }
 0x5d4   :  { %3440 = vmatpush1.bf16.msra.mxu0 %v4069_v13 }
 0x5d5   :  { %3442 = vmatprep.subr.bf16.mxu0 %v4072_v14  ;;  %3496 = vmatpush1.bf16.msra.mxu1 %v4016_v23 }
 0x5d6   :  { %3498 = vmatprep.subr.bf16.mxu1 %v4019_v25 }
 0x5d8   :  { %3444 = vmatpush1.bf16.msra.mxu0 %v4075_v21 }
 0x5d9   :  { %3446 = vmatprep.subr.bf16.mxu0 %v4078_v22  ;;  %3500 = vmatpush1.bf16.msra.mxu1 %v4023_v31 }
 0x5da   :  { %3502 = vmatprep.subr.bf16.mxu1 %v4027_v32 }
 0x5dc   :  { %3448 = vmatpush1.bf16.msra.mxu0 %v4081_v29 }
 0x5dd   :  { %3450 = vmatprep.subr.bf16.mxu0 %v4084_v30  ;;  %3504 = vmatpush1.bf16.msra.mxu1 %v4031_v37 }
 0x5de   :  { %3506 = vmatprep.subr.bf16.mxu1 %v4034_v38 }
 0x5e0   :  { %3452 = vmatpush1.bf16.msra.mxu0 %v4087_v39 }
 0x5e1   :  { %3454 = vmatprep.subr.bf16.mxu0 %v4090_v40  ;;  %3508 = vmatpush1.bf16.msra.mxu1 %v4037_v43 }
 0x5e2   :  { %3510 = vmatprep.subr.bf16.mxu1 %v4040_v44 }
 0x5e4   :  { %3456 = vmatpush1.bf16.msra.mxu0 %v4093_v47 }
 0x5e5   :  { %3458 = vmatprep.subr.bf16.mxu0 %v4096_v48  ;;  %3512 = vmatpush1.bf16.msra.mxu1 %v4043_v49 }
 0x5e6   :  { %3514 = vmatprep.subr.bf16.mxu1 %v4046_v50 }
 0x5e8   :  { %3460 = vmatpush1.bf16.msra.mxu0 %v4099_v53 }
 0x5e9   :  { %3461 = vmatprep.subr.bf16.mxu0 %v3919_v59  ;;  %3516 = vmatpush1.bf16.msra.mxu1 %v4049_v55 }
 0x5ea   :  { %3518 = vmatprep.subr.bf16.mxu1 %v4052_v56 }
 0x5eb   :  { %1853 = vmatmul.mubr.f32.vlgmr.msra.gmra.mrb[8].mxu0 %v1644_v63 }
 0x5ec   :  { %2884 = vmatprep.mubr.msk.f32.mxu0 %vm3920_vm2, %v3918_v0  ;;  %3463 = vmatpush3.bf16.msra.mxu0 %v3462_v2 }
 0x5ed   :  { %3464 = vmatprep.subr.bf16.mxu0 %v3919_v59 }
 0x5f0   :  { %3466 = vmatpush3.bf16.msra.mxu0 %v3465_v11 }
 0x5f1   :  { %3467 = vmatprep.subr.bf16.mxu0 %v3919_v59 }
 0x5f4   :  { %3469 = vmatpush3.bf16.msra.mxu0 %v3468_v19 }
 0x5f5   :  { %3470 = vmatprep.subr.bf16.mxu0 %v3919_v59 }
 0x5f8   :  { %3472 = vmatpush3.bf16.msra.mxu0 %v3471_v26 }
 0x5f9   :  { %3473 = vmatprep.subr.bf16.mxu0 %v3919_v59 }
 0x5fc   :  { %3475 = vmatpush3.bf16.msra.mxu0 %v3474_v33 }
 0x5fd   :  { %3476 = vmatprep.subr.bf16.mxu0 %v3919_v59 }
 0x600   :  { %3478 = vmatpush3.bf16.msra.mxu0 %v3477_v46 }
 0x601   :  { %3479 = vmatprep.subr.bf16.mxu0 %v3919_v59 }
 0x604   :  { %3481 = vmatpush3.bf16.msra.mxu0 %v3480_v54 }
 0x605   :  { %3482 = vmatprep.subr.bf16.mxu0 %v3919_v59 }
 0x608   :  { %3484 = vmatpush3.bf16.msra.mxu0 %v3483_v60 }
 0x609   :  { %3549 = vmatprep.subr.bf16.mxu0 %v3919_v59 }
 0x69e   :  { %v1783_v63 = vpop.f32.mrb[18].mxu1 }
 0x69f   :  { %v1785_v41 = vpop.f32.mrb[19].mxu1  ;;  %v1863_v10 = vrot.slane %v1783_v63, 3 }
 0x6a0   :  { %v1864_v42 = vrot.slane %v1785_v41, 3 }
 0x6a1   :  { %v1871_v11 = vadd.f32 %v1863_v10, %v4138_v6 }
 0x6a2   :  { %v1872_v2 = vadd.f32 %v1864_v42, %v4136_v3 }
 0x6a3   :  { %v2532_v15 = vmul.f32 -1.442695, %v1871_v11  ;;  %v418_v11 = vld [vmem:[#allocation7 + $0x358] sm:$0xff] }
 0x6a4   :  { %v2533_v7 = vmul.f32 -1.442695, %v1872_v2 }
 0x6a6   :  { %3769 = vpow2.f32 %v2533_v7 }
 0x6a7   :  { %3771 = vpow2.f32 %v2532_v15  ;;  %v419_v15 = vld [vmem:[#allocation7 + $0x360] sm:$0xff] }
 0x6b0   :  { %v3770_v16 = vpop.eup %3769 }
 0x6b1   :  { %v1884_v19 = vadd.f32 1.0, %v3770_v16  ;;  %v3772_v20 = vpop.eup %3771 }
 0x6b2   :  { %v1878_v27 = vadd.f32 1.0, %v3772_v20 }
 0x6b3   :  { %3773 = vrcp.f32 %v1884_v19  ;;  %v420_v19 = vld [vmem:[#allocation7 + $0x368] sm:$0xff] }
 0x6b4   :  { %3775 = vrcp.f32 %v1878_v27  ;;  %v3568_v20 = vpack.c.bf16 %v420_v19, %v419_v15  ;;  %v438_v19 = vld [vmem:[#allocation7 + $0x3f8] sm:$0xff] }
 0x6bd   :  { %v3774_v26 = vpop.eup %3773 }
 0x6be   :  { %v1897_v28 = vmul.f32 %v3774_v26, %v1895_v24  ;;  %v1854_v33 = vpop.f32.mrb[8].mxu0  ;;  %v3776_v57 = vpop.eup %3775  ;;  %v421_v24 = vld [vmem:[#allocation7 + $0x370] sm:$0xff]  ;;  %v422_v26 = vld [vmem:[#allocation7 + $0x378] sm:$0xff] }
 0x6bf   :  { %v1865_v36 = vrot.slane %v1854_v33, 3  ;;  %v1856_v45 = vpop.f32.mrb[9].mxu0  ;;  %v3571_v27 = vpack.c.bf16 %v422_v26, %v421_v24 }
 0x6c0   :  { %v1866_v46 = vrot.slane %v1856_v45, 3 }
 0x6c1   :  { %v1873_v51 = vadd.f32 %v1865_v36, %v4142_v34 }
 0x6c2   :  { %v1874_v52 = vadd.f32 %v1866_v46, %v4144_v35 }
 0x6c3   :  { %3777 = vtanh.f32 %v1873_v51 }
 0x6c4   :  { %v2534_v54 = vmul.f32 -1.442695, %v1874_v52 }
 0x6c6   :  { %3779 = vpow2.f32 %v2534_v54 }
 0x6cd   :  { %v3778_v58 = vpop.eup %3777 }
 0x6ce   :  { %v1898_v60 = vmul.f32 %v3778_v58, %v3776_v57 }
 0x6d0   :  { %v3780_v63 = vpop.eup %3779  ;;  %v4408_v1 = vadd.f32 %v1898_v60, %v1897_v28 }
 0x6d1   :  { %v1891_v41 = vadd.f32 1.0, %v3780_v63 }
 0x6d2   :  { %3781 = vtanh.f32 %v4408_v1  ;;  %v2154_v63 = vrot.slane %v4408_v1, 7 }
 0x6d3   :  { %3783 = vrcp.f32 %v1891_v41 }
 0x6dc   :  { %v3782_v42 = vpop.eup %3781 }
 0x6dd   :  { %v3784_v2 = vpop.eup %3783 }
 0x6de   :  { %v1901_v7 = vmul.f32 %v3784_v2, %v3782_v42 }
 0x6e0   :  { %v1903_v10 = vrot.slane %v1901_v7, 5 }
 0x6e2   :  { %2885 = vmatmul.mubr.f32.vlgmr.msra.gmra.mrb[2].mxu0 %v1903_v10  ;;  %2041 = vmatmul.mubr.f32.vlgmr.msra.gmra.mrb[20].mxu1 %v1903_v10 }
 0x6e3   :  { %3520 = vmatpush1.bf16.msra.mxu1 %v4055_v61  ;;  %2111 = vmatprep.mubr.f32.mxu1 %v3918_v0 }
 0x6e4   :  { %3522 = vmatprep.subr.bf16.mxu1 %v4058_v62  ;;  %2919 = vmatprep.mubr.msk.f32.mxu0 %vm3920_vm2, %v3918_v0 }
 0x6e7   :  { %3524 = vmatpush1.bf16.msra.mxu1 %v4062_v4 }
 0x6e8   :  { %3526 = vmatprep.subr.bf16.mxu1 %v4066_v5 }
 0x6eb   :  { %3528 = vmatpush1.bf16.msra.mxu1 %v4069_v13 }
 0x6ec   :  { %3530 = vmatprep.subr.bf16.mxu1 %v4072_v14 }
 0x6ef   :  { %3532 = vmatpush1.bf16.msra.mxu1 %v4075_v21 }
 0x6f0   :  { %3534 = vmatprep.subr.bf16.mxu1 %v4078_v22 }
 0x6f3   :  { %3536 = vmatpush1.bf16.msra.mxu1 %v4081_v29 }
 0x6f4   :  { %3538 = vmatprep.subr.bf16.mxu1 %v4084_v30 }
 0x6f7   :  { %3540 = vmatpush1.bf16.msra.mxu1 %v4087_v39 }
 0x6f8   :  { %3542 = vmatprep.subr.bf16.mxu1 %v4090_v40 }
 0x6fb   :  { %3544 = vmatpush1.bf16.msra.mxu1 %v4093_v47 }
 0x6fc   :  { %3546 = vmatprep.subr.bf16.mxu1 %v4096_v48 }
 0x6ff   :  { %3548 = vmatpush1.bf16.msra.mxu1 %v4099_v53 }
 0x700   :  { %3574 = vmatprep.subr.bf16.mxu1 %v3998_v8  ;;  %v407_v8 = vld [vmem:[#allocation7 + $0x300] sm:$0xff] }
 0x702   :  { %2112 = vmatmul.mubr.f32.vlgmr.msra.gmra.mrb[22].mxu1 %v1903_v10 }
 0x703   :  { %3576 = vmatpush1.bf16.msra.mxu1 %v4000_v9  ;;  %2299 = vmatprep.mubr.f32.mxu1 %v3918_v0  ;;  %v408_v9 = vld [vmem:[#allocation7 + $0x308] sm:$0xff] }
 0x704   :  { %3578 = vmatprep.subr.bf16.mxu1 %v4003_v12  ;;  %v3550_v12 = vpack.c.bf16 %v408_v9, %v407_v8 }
 0x706   :  { %3551 = vmatpush3.bf16.msra.mxu0 %v3550_v12 }
 0x707   :  { %3580 = vmatpush1.bf16.msra.mxu1 %v4009_v17  ;;  %3552 = vmatprep.subr.bf16.mxu0 %v3919_v59  ;;  %v409_v17 = vld [vmem:[#allocation7 + $0x310] sm:$0xff] }
 0x708   :  { %3582 = vmatprep.subr.bf16.mxu1 %v4013_v18  ;;  %v410_v18 = vld [vmem:[#allocation7 + $0x318] sm:$0xff] }
 0x70b   :  { %3584 = vmatpush1.bf16.msra.mxu1 %v4016_v23  ;;  %v3553_v23 = vpack.c.bf16 %v410_v18, %v409_v17 }
 0x70c   :  { %3586 = vmatprep.subr.bf16.mxu1 %v4019_v25  ;;  %v411_v25 = vld [vmem:[#allocation7 + $0x320] sm:$0xff] }
 0x70d   :  { %3554 = vmatpush3.bf16.msra.mxu0 %v3553_v23 }
 0x70e   :  { %3555 = vmatprep.subr.bf16.mxu0 %v3919_v59 }
 0x70f   :  { %3588 = vmatpush1.bf16.msra.mxu1 %v4023_v31  ;;  %v412_v31 = vld [vmem:[#allocation7 + $0x328] sm:$0xff] }
 0x710   :  { %3590 = vmatprep.subr.bf16.mxu1 %v4027_v32  ;;  %v3556_v32 = vpack.c.bf16 %v412_v31, %v411_v25 }
 0x712   :  { %3557 = vmatpush3.bf16.msra.mxu0 %v3556_v32 }
 0x713   :  { %3592 = vmatpush1.bf16.msra.mxu1 %v4031_v37  ;;  %3558 = vmatprep.subr.bf16.mxu0 %v3919_v59  ;;  %v413_v37 = vld [vmem:[#allocation7 + $0x330] sm:$0xff] }
 0x714   :  { %3594 = vmatprep.subr.bf16.mxu1 %v4034_v38  ;;  %v414_v38 = vld [vmem:[#allocation7 + $0x338] sm:$0xff] }
 0x717   :  { %3596 = vmatpush1.bf16.msra.mxu1 %v4037_v43  ;;  %v3559_v43 = vpack.c.bf16 %v414_v38, %v413_v37 }
 0x718   :  { %3598 = vmatprep.subr.bf16.mxu1 %v4040_v44  ;;  %v415_v44 = vld [vmem:[#allocation7 + $0x340] sm:$0xff] }
 0x719   :  { %3560 = vmatpush3.bf16.msra.mxu0 %v3559_v43 }
 0x71a   :  { %3561 = vmatprep.subr.bf16.mxu0 %v3919_v59 }
 0x71b   :  { %3600 = vmatpush1.bf16.msra.mxu1 %v4043_v49  ;;  %v416_v49 = vld [vmem:[#allocation7 + $0x348] sm:$0xff] }
 0x71c   :  { %3602 = vmatprep.subr.bf16.mxu1 %v4046_v50  ;;  %v3562_v50 = vpack.c.bf16 %v416_v49, %v415_v44  ;;  %v434_v49 = vld [vmem:[#allocation7 + $0x3d8] sm:$0xff] }
 0x71e   :  { %3563 = vmatpush3.bf16.msra.mxu0 %v3562_v50 }
 0x71f   :  { %3604 = vmatpush1.bf16.msra.mxu1 %v4049_v55  ;;  %3564 = vmatprep.subr.bf16.mxu0 %v3919_v59  ;;  %v417_v55 = vld [vmem:[#allocation7 + $0x350] sm:$0xff] }
 0x720   :  { %v3565_v16 = vpack.c.bf16 %v418_v11, %v417_v55  ;;  %v435_v55 = vld [vmem:[#allocation7 + $0x3e0] sm:$0xff]  ;;  %v436_v11 = vld [vmem:[#allocation7 + $0x3e8] sm:$0xff] }
 0x721   :  { %v3656_v15 = vpack.c.bf16 %v436_v11, %v435_v55 }
 0x722   :  { %3566 = vmatpush3.bf16.msra.mxu0 %v3565_v16  ;;  %v437_v16 = vld [vmem:[#allocation7 + $0x3f0] sm:$0xff] }
 0x723   :  { %3567 = vmatprep.subr.bf16.mxu0 %v3919_v59 }
 0x726   :  { %3569 = vmatpush3.bf16.msra.mxu0 %v3568_v20  ;;  %v3659_v20 = vpack.c.bf16 %v438_v19, %v437_v16 }
 0x727   :  { %3570 = vmatprep.subr.bf16.mxu0 %v3919_v59 }
 0x72a   :  { %3572 = vmatpush3.bf16.msra.mxu0 %v3571_v27 }
 0x72b   :  { %3606 = vmatprep.subr.bf16.mxu0 %v4052_v56 }
 0x7b5   :  { %v2042_v28 = vpop.f32.mrb[20].mxu1 }
 0x7b6   :  { %v2044_v33 = vpop.f32.mrb[21].mxu1  ;;  %v2122_v51 = vrot.slane %v2042_v28, 2 }
 0x7b7   :  { %v2123_v36 = vrot.slane %v2044_v33, 2 }
 0x7b8   :  { %v2130_v52 = vadd.f32 %v2122_v51, %v4138_v6 }
 0x7b9   :  { %v2131_v45 = vadd.f32 %v2123_v36, %v4136_v3 }
 0x7ba   :  { %v2535_v54 = vmul.f32 -1.442695, %v2130_v52 }
 0x7bb   :  { %v2536_v46 = vmul.f32 -1.442695, %v2131_v45 }
 0x7bd   :  { %3785 = vpow2.f32 %v2536_v46 }
 0x7be   :  { %3787 = vpow2.f32 %v2535_v54 }
 0x7c7   :  { %v3786_v57 = vpop.eup %3785 }
 0x7c8   :  { %v2143_v58 = vadd.f32 1.0, %v3786_v57  ;;  %v3788_v60 = vpop.eup %3787 }
 0x7c9   :  { %v2137_v56 = vadd.f32 1.0, %v3788_v60 }
 0x7ca   :  { %3789 = vrcp.f32 %v2143_v58 }
 0x7cb   :  { %3791 = vrcp.f32 %v2137_v56 }
 0x7d4   :  { %v3790_v41 = vpop.eup %3789 }
 0x7d5   :  { %v2156_v42 = vmul.f32 %v3790_v41, %v2154_v63  ;;  %v2113_v2 = vpop.f32.mrb[22].mxu1  ;;  %v3792_v18 = vpop.eup %3791 }
 0x7d6   :  { %v2124_v7 = vrot.slane %v2113_v2, 2  ;;  %v2115_v10 = vpop.f32.mrb[23].mxu1 }
 0x7d7   :  { %v2125_v8 = vrot.slane %v2115_v10, 2 }
 0x7d8   :  { %v2132_v9 = vadd.f32 %v2124_v7, %v4142_v34 }
 0x7d9   :  { %v2133_v12 = vadd.f32 %v2125_v8, %v4144_v35 }
 0x7da   :  { %3793 = vtanh.f32 %v2132_v9 }
 0x7db   :  { %v2537_v17 = vmul.f32 -1.442695, %v2133_v12 }
 0x7dd   :  { %3795 = vpow2.f32 %v2537_v17 }
 0x7e4   :  { %v3794_v23 = vpop.eup %3793 }
 0x7e5   :  { %v2157_v25 = vmul.f32 %v3794_v23, %v3792_v18 }
 0x7e7   :  { %v3796_v31 = vpop.eup %3795  ;;  %v4459_v1 = vadd.f32 %v2157_v25, %v2156_v42 }
 0x7e8   :  { %v2150_v32 = vadd.f32 1.0, %v3796_v31 }
 0x7e9   :  { %3797 = vtanh.f32 %v4459_v1  ;;  %v2413_v57 = vrot.slane %v4459_v1, 7 }
 0x7ea   :  { %3799 = vrcp.f32 %v2150_v32 }
 0x7f3   :  { %v3798_v37 = vpop.eup %3797 }
 0x7f4   :  { %v3800_v38 = vpop.eup %3799 }
 0x7f5   :  { %v2160_v43 = vmul.f32 %v3800_v38, %v3798_v37 }
 0x7f7   :  { %v2162_v44 = vrot.slane %v2160_v43, 6 }
 0x7f9   :  { %2920 = vmatmul.mubr.f32.vlgmr.msra.gmra.mrb[2].mxu0 %v2162_v44  ;;  %2300 = vmatmul.mubr.f32.vlgmr.msra.gmra.mrb[24].mxu1 %v2162_v44 }
 0x7fa   :  { %3608 = vmatpush1.bf16.msra.mxu0 %v4055_v61  ;;  %2370 = vmatprep.mubr.f32.mxu0 %v3918_v0  ;;  %v423_v61 = vld [vmem:[#allocation7 + $0x380] sm:$0xff] }
 0x7fb   :  { %3610 = vmatprep.subr.bf16.mxu0 %v4058_v62  ;;  %v424_v62 = vld [vmem:[#allocation7 + $0x388] sm:$0xff] }
 0x7fe   :  { %3612 = vmatpush1.bf16.msra.mxu0 %v4062_v4  ;;  %v3638_v4 = vpack.c.bf16 %v424_v62, %v423_v61 }
 0x7ff   :  { %3614 = vmatprep.subr.bf16.mxu0 %v4066_v5  ;;  %v425_v5 = vld [vmem:[#allocation7 + $0x390] sm:$0xff] }
 0x802   :  { %3616 = vmatpush1.bf16.msra.mxu0 %v4069_v13  ;;  %v426_v13 = vld [vmem:[#allocation7 + $0x398] sm:$0xff] }
 0x803   :  { %3618 = vmatprep.subr.bf16.mxu0 %v4072_v14  ;;  %v3641_v14 = vpack.c.bf16 %v426_v13, %v425_v5 }
 0x806   :  { %3620 = vmatpush1.bf16.msra.mxu0 %v4075_v21  ;;  %v427_v21 = vld [vmem:[#allocation7 + $0x3a0] sm:$0xff] }
 0x807   :  { %3622 = vmatprep.subr.bf16.mxu0 %v4078_v22  ;;  %v428_v22 = vld [vmem:[#allocation7 + $0x3a8] sm:$0xff] }
 0x80a   :  { %3624 = vmatpush1.bf16.msra.mxu0 %v4081_v29  ;;  %v3644_v29 = vpack.c.bf16 %v428_v22, %v427_v21 }
 0x80b   :  { %3626 = vmatprep.subr.bf16.mxu0 %v4084_v30  ;;  %v429_v30 = vld [vmem:[#allocation7 + $0x3b0] sm:$0xff] }
 0x80e   :  { %3628 = vmatpush1.bf16.msra.mxu0 %v4087_v39 }
 0x80f   :  { %3630 = vmatprep.subr.bf16.mxu0 %v4090_v40  ;;  %v431_v40 = vld [vmem:[#allocation7 + $0x3c0] sm:$0xff] }
 0x812   :  { %3632 = vmatpush1.bf16.msra.mxu0 %v4093_v47  ;;  %v432_v47 = vld [vmem:[#allocation7 + $0x3c8] sm:$0xff] }
 0x813   :  { %3634 = vmatprep.subr.bf16.mxu0 %v4096_v48  ;;  %v3650_v48 = vpack.c.bf16 %v432_v47, %v431_v40 }
 0x816   :  { %3636 = vmatpush1.bf16.msra.mxu0 %v4099_v53  ;;  %v433_v53 = vld [vmem:[#allocation7 + $0x3d0] sm:$0xff] }
 0x817   :  { %3637 = vmatprep.subr.bf16.mxu0 %v3919_v59  ;;  %v3653_v50 = vpack.c.bf16 %v434_v49, %v433_v53 }
 0x819   :  { %2371 = vmatmul.mubr.f32.vlgmr.msra.gmra.mrb[10].mxu0 %v2162_v44 }
 0x81a   :  { %2954 = vmatprep.mubr.msk.f32.mxu0 %vm3920_vm2, %v3918_v0  ;;  %3639 = vmatpush3.bf16.msra.mxu0 %v3638_v4  ;;  %v430_v0 = vld [vmem:[#allocation7 + $0x3b8] sm:$0xff] }
 0x81b   :  { %3640 = vmatprep.subr.bf16.mxu0 %v3919_v59  ;;  %v3647_v39 = vpack.c.bf16 %v430_v0, %v429_v30 }
 0x81e   :  { %3642 = vmatpush3.bf16.msra.mxu0 %v3641_v14 }
 0x81f   :  { %3643 = vmatprep.subr.bf16.mxu0 %v3919_v59 }
 0x822   :  { %3645 = vmatpush3.bf16.msra.mxu0 %v3644_v29 }
 0x823   :  { %3646 = vmatprep.subr.bf16.mxu0 %v3919_v59 }
 0x826   :  { %3648 = vmatpush3.bf16.msra.mxu0 %v3647_v39 }
 0x827   :  { %3649 = vmatprep.subr.bf16.mxu0 %v3919_v59 }
 0x82a   :  { %3651 = vmatpush3.bf16.msra.mxu0 %v3650_v48 }
 0x82b   :  { %3652 = vmatprep.subr.bf16.mxu0 %v3919_v59 }
 0x82e   :  { %3654 = vmatpush3.bf16.msra.mxu0 %v3653_v50 }
 0x82f   :  { %3655 = vmatprep.subr.bf16.mxu0 %v3919_v59 }
 0x832   :  { %3657 = vmatpush3.bf16.msra.mxu0 %v3656_v15 }
 0x833   :  { %3658 = vmatprep.subr.bf16.mxu0 %v3919_v59 }
 0x836   :  { %3660 = vmatpush3.bf16.msra.mxu0 %v3659_v20 }
 0x8cc   :  { %v2301_v24 = vpop.f32.mrb[24].mxu1 }
 0x8cd   :  { %v2303_v26 = vpop.f32.mrb[25].mxu1  ;;  %v2381_v36 = vrot.slane %v2301_v24, 1 }
 0x8ce   :  { %v2382_v27 = vrot.slane %v2303_v26, 1 }
 0x8cf   :  { %v2389_v45 = vadd.f32 %v2381_v36, %v4138_v6 }
 0x8d0   :  { %v2390_v28 = vadd.f32 %v2382_v27, %v4136_v3 }
 0x8d1   :  { %v2538_v46 = vmul.f32 -1.442695, %v2389_v45 }
 0x8d2   :  { %v2539_v33 = vmul.f32 -1.442695, %v2390_v28 }
 0x8d4   :  { %3801 = vpow2.f32 %v2539_v33 }
 0x8d5   :  { %3803 = vpow2.f32 %v2538_v46 }
 0x8de   :  { %v3802_v51 = vpop.eup %3801 }
 0x8df   :  { %v2402_v52 = vadd.f32 1.0, %v3802_v51  ;;  %v3804_v54 = vpop.eup %3803 }
 0x8e0   :  { %v2396_v58 = vadd.f32 1.0, %v3804_v54 }
 0x8e1   :  { %3805 = vrcp.f32 %v2402_v52 }
 0x8e2   :  { %3807 = vrcp.f32 %v2396_v58 }
 0x8eb   :  { %v3806_v59 = vpop.eup %3805 }
 0x8ec   :  { %v2415_v60 = vmul.f32 %v3806_v59, %v2413_v57  ;;  %v2372_v63 = vpop.f32.mrb[10].mxu0  ;;  %v3808_v7 = vpop.eup %3807 }
 0x8ed   :  { %v2383_v41 = vrot.slane %v2372_v63, 1  ;;  %v2374_v56 = vpop.f32.mrb[11].mxu0 }
 0x8ee   :  { %v2384_v3 = vrot.slane %v2374_v56, 1 }
 0x8ef   :  { %v2391_v42 = vadd.f32 %v2383_v41, %v4142_v34  ;;  %v439_v34 = vld [vmem:[%s4513_s5] sm:$0x1] }
 0x8f0   :  { %v2392_v6 = vadd.f32 %v2384_v3, %v4144_v35 }
 0x8f1   :  { %3809 = vtanh.f32 %v2391_v42 }
 0x8f2   :  { %v2540_v2 = vmul.f32 -1.442695, %v2392_v6 }
 0x8f4   :  { %3811 = vpow2.f32 %v2540_v2 }
 0x8fb   :  { %v3810_v10 = vpop.eup %3809 }
 0x8fc   :  { %v2416_v8 = vmul.f32 %v3810_v10, %v3808_v7 }
 0x8fe   :  { %v3812_v9 = vpop.eup %3811  ;;  %v2417_v12 = vadd.f32 %v2416_v8, %v2415_v60 }
 0x8ff   :  { %v2409_v17 = vadd.f32 1.0, %v3812_v9 }
 0x900   :  { %3813 = vtanh.f32 %v2417_v12 }
 0x901   :  { %3815 = vrcp.f32 %v2409_v17 }
 0x90a   :  { %v3814_v18 = vpop.eup %3813 }
 0x90b   :  { %v3816_v23 = vpop.eup %3815 }
 0x90c   :  { %v2419_v25 = vmul.f32 %v3816_v23, %v3814_v18 }
 0x90e   :  { %v2421_v31 = vrot.slane %v2419_v25, 7 }
 0x910   :  { %2955 = vmatmul.mubr.f32.vlgmr.msra.gmra.mrb[2].mxu0 %v2421_v31 }
 0x9e3   :  { %v2489_v35 = vpop.f32.mrb[2].mxu0 }
 0x9e4   :  { %v3661_v1 = vadd.f32 %v2489_v35, %v439_v34  ;;  %v2956_v32 = vpop.f32.mrb[3].mxu0 }
 0x9e6   :  { %2494 = vst [vmem:[#allocation8] sm:$0x1] %v3661_v1 }
 0x9e7   :  { %3894 = shalt.err (!%p3891_p0)
}
 0x9e8   :  { %s3895_s20 = scalar_lea.hbm %s4514_s6, 16 }
 0x9e9   :  { %p3896_p1 = scmp.ne.s32.totalorder %s4514_s6, %s3895_s20  ;;  %p3899_p2 = scmp.lt.u32.totalorder %s3895_s20, %s4514_s6 }
 0x9eb   :  { %p3901_p3 = pnand %p3899_p2, %p3896_p1 }
 0x9ed   :  { %3904 = shalt.err (!%p3901_p3)
}
 0x9ee   :  { %2504 = dma.vmem_to_hbm [thread:$0]  %s2502_s15, 16, %s4514_s6, [#allocation4]  }
 0x9ef   :  { %3909 = dma.done.wait [#allocation4], 16  }
 0x9f0   :  { %3910 = vsyncadd [#allocation4], 4294967280 }
 0x9f1   :  { %2508 = vsyncpa [#allocation3], 1 }
 0x9f2   :  { %2509 = vsyncpa [#allocation6], 1 }
 0x9f3   :  { %2510 = vsyncpa [#allocation4], 1 }

</bundles_post_ra>
